<compile_context>
chip_gen: v7x
topology: tpu7x:2x2x1
jax: 0.10.0
libtpu: 0.0.40
codegen_flags: <defaults>
</compile_context>

<pallas_src>
import jax
import jax.numpy as jnp
from jax import lax
from jax.experimental import pallas as pl
from jax.experimental.pallas import tpu as pltpu


def _num_tensorcores():
    """One grid shard per TensorCore: 2 on v7x (dual-TC), else 1."""
    try:
        kind = jax.devices()[0].device_kind.lower()
    except Exception:
        return 1
    return 2 if ("v7" in kind or "7x" in kind) else 1


def char_lstm_kernel(emb_ref, w_ih_t_ref, w_cat_ref, bias_ref, b_fc_ref,
                     h0_ref, c0_ref,
                     logits_ref, hN_ref, cN_ref,
                     xg_scr):
    TB, E = emb_ref.shape            # (T*Bb, E) bf16, sequence-major within shard
    Bb, H = h0_ref.shape             # (Bb, H) f32
    T = TB // Bb
    Vp = b_fc_ref.shape[1]           # lane-padded vocab

    # Input projection for the whole shard in one MXU GEMM (bf16 in, f32 acc).
    # bias = b_ih + b_hh added once (matches torch.nn.LSTM semantics).
    xg_scr[...] = jnp.dot(emb_ref[...], w_ih_t_ref[...],
                          preferred_element_type=jnp.float32) + bias_ref[...]

    w_cat = w_cat_ref[...]                               # (H, 4H+Vp) bf16, one RHS
    b_fc_b = jnp.broadcast_to(b_fc_ref[...], (Bb, Vp))   # hoisted out of the loop

    h = h0_ref[...]                                      # f32 (Bb, H)
    c = c0_ref[...]

    # Fully unrolled static recurrence.  Iteration t does ONE fused dot on
    # h_{t-1}: columns [0,4H) are the recurrent gate contribution for step t,
    # columns [4H,4H+Vp) are the (deferred) logits of step t-1.
    for t in range(T):
        fused = jnp.dot(h.astype(w_cat.dtype), w_cat,
                        preferred_element_type=jnp.float32)       # (Bb, 4H+Vp) f32
        if t > 0:
            # Logits for step t-1: lane-aligned (Vp, t*Vp multiples of 128),
            # bf16 store, off the serial critical path.
            logits_ref[:, (t - 1) * Vp:t * Vp] = (
                fused[:, 4 * H:] + b_fc_b).astype(logits_ref.dtype)
        gates = xg_scr[t * Bb:(t + 1) * Bb, :] + fused[:, :4 * H]
        # Gate order (i, f, g, o) matches torch.nn.LSTM; each slice is a whole
        # 128-lane group (H = 128).
        i = jax.nn.sigmoid(gates[:, 0 * H:1 * H])
        f = jax.nn.sigmoid(gates[:, 1 * H:2 * H])
        g = jnp.tanh(gates[:, 2 * H:3 * H])
        o = jax.nn.sigmoid(gates[:, 3 * H:4 * H])
        c = f * c + i * g
        h = o * jnp.tanh(c)

    # Final step's logits (deferred FC for t = T-1), then final state.
    # TODO(synk): at realistic vocab sizes hold w_cat resident in MXU staging
    # registers (pltpu.matmul_push_rhs/acc_lhs/pop) and tile Vp/T with a raised
    # vmem_limit_bytes for v7x's 64 MiB VMEM.
    fused_last = jnp.dot(h.astype(w_cat.dtype), w_cat,
                         preferred_element_type=jnp.float32)
    logits_ref[:, (T - 1) * Vp:] = (
        fused_last[:, 4 * H:] + b_fc_b).astype(logits_ref.dtype)
    hN_ref[...] = h
    cN_ref[...] = c


def char_lstm_forward(x, params, hidden=None):
    """x: int32 token ids (B, T). Returns (logits (B, T, V), (h_n, c_n)) like PyTorch."""
    embed = params["embed"]
    w_ih, w_hh = params["w_ih"], params["w_hh"]
    b_ih, b_hh = params["b_ih"], params["b_hh"]
    w_fc, b_fc = params["w_fc"], params["b_fc"]

    B, T = x.shape
    V, E = embed.shape
    H = w_hh.shape[1]
    Vp = ((V + 127) // 128) * 128            # lane-dense logits / FC N-dim

    # One shard per TensorCore (as large an M as possible per recurrent dot).
    G = _num_tensorcores()
    if B % G != 0:
        G = 1
    Bb = B // G

    if hidden is None:
        h0 = jnp.zeros((B, H), jnp.float32)
        c0 = jnp.zeros((B, H), jnp.float32)
    else:
        assert hidden[0].shape[0] == 1 and hidden[1].shape[0] == 1, \
            "single-layer LSTM: expected num_layers == 1 state"
        h0 = hidden[0][0].astype(jnp.float32)
        c0 = hidden[1][0].astype(jnp.float32)

    # TODO(synk): the embedding gather stays in XLA (data-dependent gather; a
    # Pallas DMA-gather is not profitable at these sizes).
    # Permute token ids (tiny int32 tensor) so the gather directly produces the
    # shard-major, sequence-major (G, T*Bb, E) layout -- no transpose of the
    # embedded activations is ever materialized.
    ids = x.reshape(G, Bb, T).transpose(0, 2, 1).reshape(G, T * Bb)
    emb = jnp.take(embed.astype(jnp.bfloat16), ids, axis=0)      # (G, T*Bb, E) bf16

    # Pre-transposed bf16 weights; W_hh^T and W_fc^T fused into one RHS.
    w_ih_t = w_ih.T.astype(jnp.bfloat16)                          # (E, 4H)
    w_hh_t = w_hh.T.astype(jnp.bfloat16)                          # (H, 4H)
    w_fc_t = jnp.pad(w_fc.T, ((0, 0), (0, Vp - V))).astype(jnp.bfloat16)  # (H, Vp)
    w_cat = jnp.concatenate([w_hh_t, w_fc_t], axis=1)             # (H, 4H+Vp)
    bias = (b_ih + b_hh).reshape(1, 4 * H)                        # f32
    b_fc_p = jnp.pad(b_fc, (0, Vp - V)).reshape(1, Vp)            # f32

    full = lambda g: (0, 0)
    kernel = pl.pallas_call(
        char_lstm_kernel,
        out_shape=(jax.ShapeDtypeStruct((B, T * Vp), jnp.bfloat16),  # batch-major logits
                   jax.ShapeDtypeStruct((B, H), jnp.float32),
                   jax.ShapeDtypeStruct((B, H), jnp.float32)),
        grid_spec=pltpu.PrefetchScalarGridSpec(
            num_scalar_prefetch=0,
            grid=(G,),
            in_specs=[
                pl.BlockSpec((None, T * Bb, E), lambda g: (g, 0, 0)),   # emb shard
                pl.BlockSpec((E, 4 * H), full),                         # w_ih^T
                pl.BlockSpec((H, 4 * H + Vp), full),                    # [w_hh^T | w_fc^T]
                pl.BlockSpec((1, 4 * H), full),                         # b_ih + b_hh
                pl.BlockSpec((1, Vp), full),                            # b_fc (padded)
                pl.BlockSpec((Bb, H), lambda g: (g, 0)),                # h0 shard
                pl.BlockSpec((Bb, H), lambda g: (g, 0)),                # c0 shard
            ],
            out_specs=(
                pl.BlockSpec((Bb, T * Vp), lambda g: (g, 0)),           # logits shard
                pl.BlockSpec((Bb, H), lambda g: (g, 0)),                # h_n shard
                pl.BlockSpec((Bb, H), lambda g: (g, 0)),                # c_n shard
            ),
            scratch_shapes=[pltpu.VMEM((T * Bb, 4 * H), jnp.float32)],  # input gates
        ),
        compiler_params=pltpu.CompilerParams(
            dimension_semantics=("parallel",),       # shards are independent
        ),
    )
    logits_k, hN, cN = kernel(emb, w_ih_t, w_cat, bias, b_fc_p, h0, c0)

    # Batch-major already: just reshape, drop vocab padding, upcast.
    logits = logits_k.reshape(B, T, Vp)[:, :, :V].astype(jnp.float32)
    return logits, (hN[None], cN[None])


def init_params(key, vocab_size, embed_dim, hidden_dim):
    ks = jax.random.split(key, 7)
    s = 1.0 / jnp.sqrt(hidden_dim)
    return {
        "embed": jax.random.normal(ks[0], (vocab_size, embed_dim), jnp.float32),
        "w_ih": jax.random.uniform(ks[1], (4 * hidden_dim, embed_dim), jnp.float32, -s, s),
        "w_hh": jax.random.uniform(ks[2], (4 * hidden_dim, hidden_dim), jnp.float32, -s, s),
        "b_ih": jax.random.uniform(ks[3], (4 * hidden_dim,), jnp.float32, -s, s),
        "b_hh": jax.random.uniform(ks[4], (4 * hidden_dim,), jnp.float32, -s, s),
        "w_fc": jax.random.uniform(ks[5], (vocab_size, hidden_dim), jnp.float32, -s, s),
        "b_fc": jax.random.uniform(ks[6], (vocab_size,), jnp.float32, -s, s),
    }


def reference_forward(x, p):
    """Pure-JAX f32 reference matching torch.nn.LSTM(batch_first=True) semantics."""
    emb = jnp.take(p["embed"], x, axis=0)           # (B, T, E)
    B, T, E = emb.shape
    H = p["w_hh"].shape[1]

    def step(carry, x_t):
        h, c = carry
        gates = (x_t @ p["w_ih"].T + p["b_ih"] + h @ p["w_hh"].T + p["b_hh"])
        i, f, g, o = jnp.split(gates, 4, axis=-1)
        i, f, o = jax.nn.sigmoid(i), jax.nn.sigmoid(f), jax.nn.sigmoid(o)
        g = jnp.tanh(g)
        c = f * c + i * g
        h = o * jnp.tanh(c)
        return (h, c), h

    (hN, cN), hs = lax.scan(step,
                            (jnp.zeros((B, H), jnp.float32),
                             jnp.zeros((B, H), jnp.float32)),
                            jnp.transpose(emb, (1, 0, 2)))
    out = jnp.transpose(hs, (1, 0, 2))              # (B, T, H)
    logits = out @ p["w_fc"].T + p["b_fc"]
    return logits, (hN[None], cN[None])


if __name__ == "__main__":
    # Module defaults: embed_dim=64, hidden_dim=128; char-level vocab of 65.
    VOCAB, EMBED, HIDDEN = 65, 64, 128
    B, T = 16, 8

    key = jax.random.PRNGKey(0)
    kp, kx = jax.random.split(key)
    params = init_params(kp, VOCAB, EMBED, HIDDEN)
    x = jax.random.randint(kx, (B, T), 0, VOCAB, dtype=jnp.int32)

    fwd = jax.jit(char_lstm_forward)
    logits, (hN, cN) = fwd(x, params)
    jax.block_until_ready((logits, hN, cN))

    ref_logits, (ref_hN, ref_cN) = reference_forward(x, params)
    assert logits.shape == (B, T, VOCAB)
    assert hN.shape == (1, B, HIDDEN) and cN.shape == (1, B, HIDDEN)
    # Tolerance sized for bf16 weight/activation/logit storage with f32 accumulation.
    assert jnp.allclose(logits, ref_logits, atol=3e-2, rtol=3e-2)
    assert jnp.allclose(hN, ref_hN, atol=3e-2, rtol=3e-2)
    assert jnp.allclose(cN, ref_cN, atol=3e-2, rtol=3e-2)

    print("KERNEL_OK")
</pallas_src>

<mosaic_0001>
module attributes {stable_mosaic.version = 11 : i64} {
  func.func @char_lstm_kernel(%arg0: i32, %arg1: memref<1x128x64xbf16, #tpu.memory_space<vmem>>, %arg2: memref<64x512xbf16, #tpu.memory_space<vmem>>, %arg3: memref<128x640xbf16, #tpu.memory_space<vmem>>, %arg4: memref<1x512xf32, #tpu.memory_space<vmem>>, %arg5: memref<1x128xf32, #tpu.memory_space<vmem>>, %arg6: memref<16x128xf32, #tpu.memory_space<vmem>>, %arg7: memref<16x128xf32, #tpu.memory_space<vmem>>, %arg8: memref<16x1024xbf16, #tpu.memory_space<vmem>>, %arg9: memref<16x128xf32, #tpu.memory_space<vmem>>, %arg10: memref<16x128xf32, #tpu.memory_space<vmem>>, %arg11: memref<128x512xf32, #tpu.memory_space<vmem>>) attributes {dimension_semantics = [#tpu.dimension_semantics<parallel>], iteration_bounds = array<i64: 1>, scalar_prefetch = 0 : i64, scratch_operands = 1 : i64, tpu.core_type = #tpu.core_type<tc>, window_params = [{transform_indices = @transform_0, window_bounds = array<i64: 1, 128, 64>}, {pipeline_mode = #tpu.pipeline_mode<synchronous>, transform_indices = @transform_1, window_bounds = array<i64: 64, 512>}, {pipeline_mode = #tpu.pipeline_mode<synchronous>, transform_indices = @transform_2, window_bounds = array<i64: 128, 640>}, {pipeline_mode = #tpu.pipeline_mode<synchronous>, transform_indices = @transform_3, window_bounds = array<i64: 1, 512>}, {pipeline_mode = #tpu.pipeline_mode<synchronous>, transform_indices = @transform_4, window_bounds = array<i64: 1, 128>}, {transform_indices = @transform_5, window_bounds = array<i64: 16, 128>}, {transform_indices = @transform_6, window_bounds = array<i64: 16, 128>}, {transform_indices = @transform_7, window_bounds = array<i64: 16, 1024>}, {transform_indices = @transform_8, window_bounds = array<i64: 16, 128>}, {transform_indices = @transform_9, window_bounds = array<i64: 16, 128>}]} {
    %c0 = arith.constant 0 : index
    %c0_0 = arith.constant 0 : index
    %c0_1 = arith.constant 0 : index
    %0 = vector.load %arg1[%c0, %c0_0, %c0_1] : memref<1x128x64xbf16, #tpu.memory_space<vmem>>, vector<1x128x64xbf16>
    %1 = vector.shape_cast %0 : vector<1x128x64xbf16> to vector<128x64xbf16>
    %c0_2 = arith.constant 0 : index
    %c0_3 = arith.constant 0 : index
    %2 = vector.load %arg2[%c0_2, %c0_3] : memref<64x512xbf16, #tpu.memory_space<vmem>>, vector<64x512xbf16>
    %cst = arith.constant dense<0.000000e+00> : vector<128x512xf32>
    %3 = tpu.matmul %1, %2, %cst {dimension_numbers = #tpu.dot_dimension_numbers<[1], [0], [0], [1], [0, 0, 1, 1], [], []>} : vector<128x64xbf16>, vector<64x512xbf16>, vector<128x512xf32> -> vector<128x512xf32>
    %c0_4 = arith.constant 0 : index
    %c0_5 = arith.constant 0 : index
    %4 = vector.load %arg4[%c0_4, %c0_5] : memref<1x512xf32, #tpu.memory_space<vmem>>, vector<1x512xf32>
    %5 = vector.broadcast %4 : vector<1x512xf32> to vector<128x512xf32>
    %6 = arith.addf %3, %5 : vector<128x512xf32>
    %c0_6 = arith.constant 0 : index
    %c0_7 = arith.constant 0 : index
    %7 = vector.load %arg11[%c0_6, %c0_7] : memref<128x512xf32, #tpu.memory_space<vmem>>, vector<128x512xf32>
    tpu.vector_store %arg11[%c0_6, %c0_7], %6 {strides = array<i32>} : memref<128x512xf32, #tpu.memory_space<vmem>>, vector<128x512xf32>,
    %c0_8 = arith.constant 0 : index
    %c0_9 = arith.constant 0 : index
    %8 = vector.load %arg3[%c0_8, %c0_9] : memref<128x640xbf16, #tpu.memory_space<vmem>>, vector<128x640xbf16>
    %c0_10 = arith.constant 0 : index
    %c0_11 = arith.constant 0 : index
    %9 = vector.load %arg5[%c0_10, %c0_11] : memref<1x128xf32, #tpu.memory_space<vmem>>, vector<1x128xf32>
    %10 = vector.shape_cast %9 : vector<1x128xf32> to vector<1x128xf32>
    %11 = vector.broadcast %10 : vector<1x128xf32> to vector<16x128xf32>
    %c0_12 = arith.constant 0 : index
    %c0_13 = arith.constant 0 : index
    %12 = vector.load %arg6[%c0_12, %c0_13] : memref<16x128xf32, #tpu.memory_space<vmem>>, vector<16x128xf32>
    %c0_14 = arith.constant 0 : index
    %c0_15 = arith.constant 0 : index
    %13 = vector.load %arg7[%c0_14, %c0_15] : memref<16x128xf32, #tpu.memory_space<vmem>>, vector<16x128xf32>
    %14 = arith.truncf %12 : vector<16x128xf32> to vector<16x128xbf16>
    %cst_16 = arith.constant dense<0.000000e+00> : vector<16x640xf32>
    %15 = tpu.matmul %14, %8, %cst_16 {dimension_numbers = #tpu.dot_dimension_numbers<[1], [0], [0], [1], [0, 0, 1, 1], [], []>} : vector<16x128xbf16>, vector<128x640xbf16>, vector<16x640xf32> -> vector<16x640xf32>
    %c0_17 = arith.constant 0 : index
    %c0_18 = arith.constant 0 : index
    %16 = vector.load %arg11[%c0_17, %c0_18] : memref<128x512xf32, #tpu.memory_space<vmem>>, vector<16x512xf32>
    %17 = vector.extract_strided_slice %15 {offsets = [0, 0], sizes = [16, 512], strides = [1, 1]} : vector<16x640xf32> to vector<16x512xf32>
    %18 = arith.addf %16, %17 : vector<16x512xf32>
    %19 = vector.extract_strided_slice %18 {offsets = [0, 0], sizes = [16, 128], strides = [1, 1]} : vector<16x512xf32> to vector<16x128xf32>
    %20 = arith.negf %19 : vector<16x128xf32>
    %21 = math.exp %20 : vector<16x128xf32>
    %cst_19 = arith.constant 1.000000e+00 : f32
    %22 = vector.broadcast %cst_19 : f32 to vector<16x128xf32>
    %23 = arith.addf %22, %21 : vector<16x128xf32>
    %24 = arith.divf %22, %23 : vector<16x128xf32>
    %25 = vector.extract_strided_slice %18 {offsets = [0, 128], sizes = [16, 128], strides = [1, 1]} : vector<16x512xf32> to vector<16x128xf32>
    %26 = arith.negf %25 : vector<16x128xf32>
    %27 = math.exp %26 : vector<16x128xf32>
    %cst_20 = arith.constant 1.000000e+00 : f32
    %28 = vector.broadcast %cst_20 : f32 to vector<16x128xf32>
    %29 = arith.addf %28, %27 : vector<16x128xf32>
    %30 = arith.divf %28, %29 : vector<16x128xf32>
    %31 = vector.extract_strided_slice %18 {offsets = [0, 256], sizes = [16, 128], strides = [1, 1]} : vector<16x512xf32> to vector<16x128xf32>
    %32 = math.tanh %31 : vector<16x128xf32>
    %33 = vector.extract_strided_slice %18 {offsets = [0, 384], sizes = [16, 128], strides = [1, 1]} : vector<16x512xf32> to vector<16x128xf32>
    %34 = arith.negf %33 : vector<16x128xf32>
    %35 = math.exp %34 : vector<16x128xf32>
    %cst_21 = arith.constant 1.000000e+00 : f32
    %36 = vector.broadcast %cst_21 : f32 to vector<16x128xf32>
    %37 = arith.addf %36, %35 : vector<16x128xf32>
    %38 = arith.divf %36, %37 : vector<16x128xf32>
    %39 = arith.mulf %30, %13 : vector<16x128xf32>
    %40 = arith.mulf %24, %32 : vector<16x128xf32>
    %41 = arith.addf %39, %40 : vector<16x128xf32>
    %42 = math.tanh %41 : vector<16x128xf32>
    %43 = arith.mulf %38, %42 : vector<16x128xf32>
    %44 = arith.truncf %43 : vector<16x128xf32> to vector<16x128xbf16>
    %cst_22 = arith.constant dense<0.000000e+00> : vector<16x640xf32>
    %45 = tpu.matmul %44, %8, %cst_22 {dimension_numbers = #tpu.dot_dimension_numbers<[1], [0], [0], [1], [0, 0, 1, 1], [], []>} : vector<16x128xbf16>, vector<128x640xbf16>, vector<16x640xf32> -> vector<16x640xf32>
    %46 = vector.extract_strided_slice %45 {offsets = [0, 512], sizes = [16, 128], strides = [1, 1]} : vector<16x640xf32> to vector<16x128xf32>
    %47 = arith.addf %46, %11 : vector<16x128xf32>
    %48 = arith.truncf %47 : vector<16x128xf32> to vector<16x128xbf16>
    %c0_23 = arith.constant 0 : index
    %c0_24 = arith.constant 0 : index
    %49 = vector.load %arg8[%c0_23, %c0_24] : memref<16x1024xbf16, #tpu.memory_space<vmem>>, vector<16x128xbf16>
    tpu.vector_store %arg8[%c0_23, %c0_24], %48 {strides = array<i32>} : memref<16x1024xbf16, #tpu.memory_space<vmem>>, vector<16x128xbf16>,
    %c16 = arith.constant 16 : index
    %c0_25 = arith.constant 0 : index
    %50 = vector.load %arg11[%c16, %c0_25] : memref<128x512xf32, #tpu.memory_space<vmem>>, vector<16x512xf32>
    %51 = vector.extract_strided_slice %45 {offsets = [0, 0], sizes = [16, 512], strides = [1, 1]} : vector<16x640xf32> to vector<16x512xf32>
    %52 = arith.addf %50, %51 : vector<16x512xf32>
    %53 = vector.extract_strided_slice %52 {offsets = [0, 0], sizes = [16, 128], strides = [1, 1]} : vector<16x512xf32> to vector<16x128xf32>
    %54 = arith.negf %53 : vector<16x128xf32>
    %55 = math.exp %54 : vector<16x128xf32>
    %cst_26 = arith.constant 1.000000e+00 : f32
    %56 = vector.broadcast %cst_26 : f32 to vector<16x128xf32>
    %57 = arith.addf %56, %55 : vector<16x128xf32>
    %58 = arith.divf %56, %57 : vector<16x128xf32>
    %59 = vector.extract_strided_slice %52 {offsets = [0, 128], sizes = [16, 128], strides = [1, 1]} : vector<16x512xf32> to vector<16x128xf32>
    %60 = arith.negf %59 : vector<16x128xf32>
    %61 = math.exp %60 : vector<16x128xf32>
    %cst_27 = arith.constant 1.000000e+00 : f32
    %62 = vector.broadcast %cst_27 : f32 to vector<16x128xf32>
    %63 = arith.addf %62, %61 : vector<16x128xf32>
    %64 = arith.divf %62, %63 : vector<16x128xf32>
    %65 = vector.extract_strided_slice %52 {offsets = [0, 256], sizes = [16, 128], strides = [1, 1]} : vector<16x512xf32> to vector<16x128xf32>
    %66 = math.tanh %65 : vector<16x128xf32>
    %67 = vector.extract_strided_slice %52 {offsets = [0, 384], sizes = [16, 128], strides = [1, 1]} : vector<16x512xf32> to vector<16x128xf32>
    %68 = arith.negf %67 : vector<16x128xf32>
    %69 = math.exp %68 : vector<16x128xf32>
    %cst_28 = arith.constant 1.000000e+00 : f32
    %70 = vector.broadcast %cst_28 : f32 to vector<16x128xf32>
    %71 = arith.addf %70, %69 : vector<16x128xf32>
    %72 = arith.divf %70, %71 : vector<16x128xf32>
    %73 = arith.mulf %64, %41 : vector<16x128xf32>
    %74 = arith.mulf %58, %66 : vector<16x128xf32>
    %75 = arith.addf %73, %74 : vector<16x128xf32>
    %76 = math.tanh %75 : vector<16x128xf32>
    %77 = arith.mulf %72, %76 : vector<16x128xf32>
    %78 = arith.truncf %77 : vector<16x128xf32> to vector<16x128xbf16>
    %cst_29 = arith.constant dense<0.000000e+00> : vector<16x640xf32>
    %79 = tpu.matmul %78, %8, %cst_29 {dimension_numbers = #tpu.dot_dimension_numbers<[1], [0], [0], [1], [0, 0, 1, 1], [], []>} : vector<16x128xbf16>, vector<128x640xbf16>, vector<16x640xf32> -> vector<16x640xf32>
    %80 = vector.extract_strided_slice %79 {offsets = [0, 512], sizes = [16, 128], strides = [1, 1]} : vector<16x640xf32> to vector<16x128xf32>
    %81 = arith.addf %80, %11 : vector<16x128xf32>
    %82 = arith.truncf %81 : vector<16x128xf32> to vector<16x128xbf16>
    %c0_30 = arith.constant 0 : index
    %c128 = arith.constant 128 : index
    %83 = vector.load %arg8[%c0_30, %c128] : memref<16x1024xbf16, #tpu.memory_space<vmem>>, vector<16x128xbf16>
    tpu.vector_store %arg8[%c0_30, %c128], %82 {strides = array<i32>} : memref<16x1024xbf16, #tpu.memory_space<vmem>>, vector<16x128xbf16>,
    %c32 = arith.constant 32 : index
    %c0_31 = arith.constant 0 : index
    %84 = vector.load %arg11[%c32, %c0_31] : memref<128x512xf32, #tpu.memory_space<vmem>>, vector<16x512xf32>
    %85 = vector.extract_strided_slice %79 {offsets = [0, 0], sizes = [16, 512], strides = [1, 1]} : vector<16x640xf32> to vector<16x512xf32>
    %86 = arith.addf %84, %85 : vector<16x512xf32>
    %87 = vector.extract_strided_slice %86 {offsets = [0, 0], sizes = [16, 128], strides = [1, 1]} : vector<16x512xf32> to vector<16x128xf32>
    %88 = arith.negf %87 : vector<16x128xf32>
    %89 = math.exp %88 : vector<16x128xf32>
    %cst_32 = arith.constant 1.000000e+00 : f32
    %90 = vector.broadcast %cst_32 : f32 to vector<16x128xf32>
    %91 = arith.addf %90, %89 : vector<16x128xf32>
    %92 = arith.divf %90, %91 : vector<16x128xf32>
    %93 = vector.extract_strided_slice %86 {offsets = [0, 128], sizes = [16, 128], strides = [1, 1]} : vector<16x512xf32> to vector<16x128xf32>
    %94 = arith.negf %93 : vector<16x128xf32>
    %95 = math.exp %94 : vector<16x128xf32>
    %cst_33 = arith.constant 1.000000e+00 : f32
    %96 = vector.broadcast %cst_33 : f32 to vector<16x128xf32>
    %97 = arith.addf %96, %95 : vector<16x128xf32>
    %98 = arith.divf %96, %97 : vector<16x128xf32>
    %99 = vector.extract_strided_slice %86 {offsets = [0, 256], sizes = [16, 128], strides = [1, 1]} : vector<16x512xf32> to vector<16x128xf32>
    %100 = math.tanh %99 : vector<16x128xf32>
    %101 = vector.extract_strided_slice %86 {offsets = [0, 384], sizes = [16, 128], strides = [1, 1]} : vector<16x512xf32> to vector<16x128xf32>
    %102 = arith.negf %101 : vector<16x128xf32>
    %103 = math.exp %102 : vector<16x128xf32>
    %cst_34 = arith.constant 1.000000e+00 : f32
    %104 = vector.broadcast %cst_34 : f32 to vector<16x128xf32>
    %105 = arith.addf %104, %103 : vector<16x128xf32>
    %106 = arith.divf %104, %105 : vector<16x128xf32>
    %107 = arith.mulf %98, %75 : vector<16x128xf32>
    %108 = arith.mulf %92, %100 : vector<16x128xf32>
    %109 = arith.addf %107, %108 : vector<16x128xf32>
    %110 = math.tanh %109 : vector<16x128xf32>
    %111 = arith.mulf %106, %110 : vector<16x128xf32>
    %112 = arith.truncf %111 : vector<16x128xf32> to vector<16x128xbf16>
    %cst_35 = arith.constant dense<0.000000e+00> : vector<16x640xf32>
    %113 = tpu.matmul %112, %8, %cst_35 {dimension_numbers = #tpu.dot_dimension_numbers<[1], [0], [0], [1], [0, 0, 1, 1], [], []>} : vector<16x128xbf16>, vector<128x640xbf16>, vector<16x640xf32> -> vector<16x640xf32>
    %114 = vector.extract_strided_slice %113 {offsets = [0, 512], sizes = [16, 128], strides = [1, 1]} : vector<16x640xf32> to vector<16x128xf32>
    %115 = arith.addf %114, %11 : vector<16x128xf32>
    %116 = arith.truncf %115 : vector<16x128xf32> to vector<16x128xbf16>
    %c0_36 = arith.constant 0 : index
    %c256 = arith.constant 256 : index
    %117 = vector.load %arg8[%c0_36, %c256] : memref<16x1024xbf16, #tpu.memory_space<vmem>>, vector<16x128xbf16>
    tpu.vector_store %arg8[%c0_36, %c256], %116 {strides = array<i32>} : memref<16x1024xbf16, #tpu.memory_space<vmem>>, vector<16x128xbf16>,
    %c48 = arith.constant 48 : index
    %c0_37 = arith.constant 0 : index
    %118 = vector.load %arg11[%c48, %c0_37] : memref<128x512xf32, #tpu.memory_space<vmem>>, vector<16x512xf32>
    %119 = vector.extract_strided_slice %113 {offsets = [0, 0], sizes = [16, 512], strides = [1, 1]} : vector<16x640xf32> to vector<16x512xf32>
    %120 = arith.addf %118, %119 : vector<16x512xf32>
    %121 = vector.extract_strided_slice %120 {offsets = [0, 0], sizes = [16, 128], strides = [1, 1]} : vector<16x512xf32> to vector<16x128xf32>
    %122 = arith.negf %121 : vector<16x128xf32>
    %123 = math.exp %122 : vector<16x128xf32>
    %cst_38 = arith.constant 1.000000e+00 : f32
    %124 = vector.broadcast %cst_38 : f32 to vector<16x128xf32>
    %125 = arith.addf %124, %123 : vector<16x128xf32>
    %126 = arith.divf %124, %125 : vector<16x128xf32>
    %127 = vector.extract_strided_slice %120 {offsets = [0, 128], sizes = [16, 128], strides = [1, 1]} : vector<16x512xf32> to vector<16x128xf32>
    %128 = arith.negf %127 : vector<16x128xf32>
    %129 = math.exp %128 : vector<16x128xf32>
    %cst_39 = arith.constant 1.000000e+00 : f32
    %130 = vector.broadcast %cst_39 : f32 to vector<16x128xf32>
    %131 = arith.addf %130, %129 : vector<16x128xf32>
    %132 = arith.divf %130, %131 : vector<16x128xf32>
    %133 = vector.extract_strided_slice %120 {offsets = [0, 256], sizes = [16, 128], strides = [1, 1]} : vector<16x512xf32> to vector<16x128xf32>
    %134 = math.tanh %133 : vector<16x128xf32>
    %135 = vector.extract_strided_slice %120 {offsets = [0, 384], sizes = [16, 128], strides = [1, 1]} : vector<16x512xf32> to vector<16x128xf32>
    %136 = arith.negf %135 : vector<16x128xf32>
    %137 = math.exp %136 : vector<16x128xf32>
    %cst_40 = arith.constant 1.000000e+00 : f32
    %138 = vector.broadcast %cst_40 : f32 to vector<16x128xf32>
    %139 = arith.addf %138, %137 : vector<16x128xf32>
    %140 = arith.divf %138, %139 : vector<16x128xf32>
    %141 = arith.mulf %132, %109 : vector<16x128xf32>
    %142 = arith.mulf %126, %134 : vector<16x128xf32>
    %143 = arith.addf %141, %142 : vector<16x128xf32>
    %144 = math.tanh %143 : vector<16x128xf32>
    %145 = arith.mulf %140, %144 : vector<16x128xf32>
    %146 = arith.truncf %145 : vector<16x128xf32> to vector<16x128xbf16>
    %cst_41 = arith.constant dense<0.000000e+00> : vector<16x640xf32>
    %147 = tpu.matmul %146, %8, %cst_41 {dimension_numbers = #tpu.dot_dimension_numbers<[1], [0], [0], [1], [0, 0, 1, 1], [], []>} : vector<16x128xbf16>, vector<128x640xbf16>, vector<16x640xf32> -> vector<16x640xf32>
    %148 = vector.extract_strided_slice %147 {offsets = [0, 512], sizes = [16, 128], strides = [1, 1]} : vector<16x640xf32> to vector<16x128xf32>
    %149 = arith.addf %148, %11 : vector<16x128xf32>
    %150 = arith.truncf %149 : vector<16x128xf32> to vector<16x128xbf16>
    %c0_42 = arith.constant 0 : index
    %c384 = arith.constant 384 : index
    %151 = vector.load %arg8[%c0_42, %c384] : memref<16x1024xbf16, #tpu.memory_space<vmem>>, vector<16x128xbf16>
    tpu.vector_store %arg8[%c0_42, %c384], %150 {strides = array<i32>} : memref<16x1024xbf16, #tpu.memory_space<vmem>>, vector<16x128xbf16>,
    %c64 = arith.constant 64 : index
    %c0_43 = arith.constant 0 : index
    %152 = vector.load %arg11[%c64, %c0_43] : memref<128x512xf32, #tpu.memory_space<vmem>>, vector<16x512xf32>
    %153 = vector.extract_strided_slice %147 {offsets = [0, 0], sizes = [16, 512], strides = [1, 1]} : vector<16x640xf32> to vector<16x512xf32>
    %154 = arith.addf %152, %153 : vector<16x512xf32>
    %155 = vector.extract_strided_slice %154 {offsets = [0, 0], sizes = [16, 128], strides = [1, 1]} : vector<16x512xf32> to vector<16x128xf32>
    %156 = arith.negf %155 : vector<16x128xf32>
    %157 = math.exp %156 : vector<16x128xf32>
    %cst_44 = arith.constant 1.000000e+00 : f32
    %158 = vector.broadcast %cst_44 : f32 to vector<16x128xf32>
    %159 = arith.addf %158, %157 : vector<16x128xf32>
    %160 = arith.divf %158, %159 : vector<16x128xf32>
    %161 = vector.extract_strided_slice %154 {offsets = [0, 128], sizes = [16, 128], strides = [1, 1]} : vector<16x512xf32> to vector<16x128xf32>
    %162 = arith.negf %161 : vector<16x128xf32>
    %163 = math.exp %162 : vector<16x128xf32>
    %cst_45 = arith.constant 1.000000e+00 : f32
    %164 = vector.broadcast %cst_45 : f32 to vector<16x128xf32>
    %165 = arith.addf %164, %163 : vector<16x128xf32>
    %166 = arith.divf %164, %165 : vector<16x128xf32>
    %167 = vector.extract_strided_slice %154 {offsets = [0, 256], sizes = [16, 128], strides = [1, 1]} : vector<16x512xf32> to vector<16x128xf32>
    %168 = math.tanh %167 : vector<16x128xf32>
    %169 = vector.extract_strided_slice %154 {offsets = [0, 384], sizes = [16, 128], strides = [1, 1]} : vector<16x512xf32> to vector<16x128xf32>
    %170 = arith.negf %169 : vector<16x128xf32>
    %171 = math.exp %170 : vector<16x128xf32>
    %cst_46 = arith.constant 1.000000e+00 : f32
    %172 = vector.broadcast %cst_46 : f32 to vector<16x128xf32>
    %173 = arith.addf %172, %171 : vector<16x128xf32>
    %174 = arith.divf %172, %173 : vector<16x128xf32>
    %175 = arith.mulf %166, %143 : vector<16x128xf32>
    %176 = arith.mulf %160, %168 : vector<16x128xf32>
    %177 = arith.addf %175, %176 : vector<16x128xf32>
    %178 = math.tanh %177 : vector<16x128xf32>
    %179 = arith.mulf %174, %178 : vector<16x128xf32>
    %180 = arith.truncf %179 : vector<16x128xf32> to vector<16x128xbf16>
    %cst_47 = arith.constant dense<0.000000e+00> : vector<16x640xf32>
    %181 = tpu.matmul %180, %8, %cst_47 {dimension_numbers = #tpu.dot_dimension_numbers<[1], [0], [0], [1], [0, 0, 1, 1], [], []>} : vector<16x128xbf16>, vector<128x640xbf16>, vector<16x640xf32> -> vector<16x640xf32>
    %182 = vector.extract_strided_slice %181 {offsets = [0, 512], sizes = [16, 128], strides = [1, 1]} : vector<16x640xf32> to vector<16x128xf32>
    %183 = arith.addf %182, %11 : vector<16x128xf32>
    %184 = arith.truncf %183 : vector<16x128xf32> to vector<16x128xbf16>
    %c0_48 = arith.constant 0 : index
    %c512 = arith.constant 512 : index
    %185 = vector.load %arg8[%c0_48, %c512] : memref<16x1024xbf16, #tpu.memory_space<vmem>>, vector<16x128xbf16>
    tpu.vector_store %arg8[%c0_48, %c512], %184 {strides = array<i32>} : memref<16x1024xbf16, #tpu.memory_space<vmem>>, vector<16x128xbf16>,
    %c80 = arith.constant 80 : index
    %c0_49 = arith.constant 0 : index
    %186 = vector.load %arg11[%c80, %c0_49] : memref<128x512xf32, #tpu.memory_space<vmem>>, vector<16x512xf32>
    %187 = vector.extract_strided_slice %181 {offsets = [0, 0], sizes = [16, 512], strides = [1, 1]} : vector<16x640xf32> to vector<16x512xf32>
    %188 = arith.addf %186, %187 : vector<16x512xf32>
    %189 = vector.extract_strided_slice %188 {offsets = [0, 0], sizes = [16, 128], strides = [1, 1]} : vector<16x512xf32> to vector<16x128xf32>
    %190 = arith.negf %189 : vector<16x128xf32>
    %191 = math.exp %190 : vector<16x128xf32>
    %cst_50 = arith.constant 1.000000e+00 : f32
    %192 = vector.broadcast %cst_50 : f32 to vector<16x128xf32>
    %193 = arith.addf %192, %191 : vector<16x128xf32>
    %194 = arith.divf %192, %193 : vector<16x128xf32>
    %195 = vector.extract_strided_slice %188 {offsets = [0, 128], sizes = [16, 128], strides = [1, 1]} : vector<16x512xf32> to vector<16x128xf32>
    %196 = arith.negf %195 : vector<16x128xf32>
    %197 = math.exp %196 : vector<16x128xf32>
    %cst_51 = arith.constant 1.000000e+00 : f32
    %198 = vector.broadcast %cst_51 : f32 to vector<16x128xf32>
    %199 = arith.addf %198, %197 : vector<16x128xf32>
    %200 = arith.divf %198, %199 : vector<16x128xf32>
    %201 = vector.extract_strided_slice %188 {offsets = [0, 256], sizes = [16, 128], strides = [1, 1]} : vector<16x512xf32> to vector<16x128xf32>
    %202 = math.tanh %201 : vector<16x128xf32>
    %203 = vector.extract_strided_slice %188 {offsets = [0, 384], sizes = [16, 128], strides = [1, 1]} : vector<16x512xf32> to vector<16x128xf32>
    %204 = arith.negf %203 : vector<16x128xf32>
    %205 = math.exp %204 : vector<16x128xf32>
    %cst_52 = arith.constant 1.000000e+00 : f32
    %206 = vector.broadcast %cst_52 : f32 to vector<16x128xf32>
    %207 = arith.addf %206, %205 : vector<16x128xf32>
    %208 = arith.divf %206, %207 : vector<16x128xf32>
    %209 = arith.mulf %200, %177 : vector<16x128xf32>
    %210 = arith.mulf %194, %202 : vector<16x128xf32>
    %211 = arith.addf %209, %210 : vector<16x128xf32>
    %212 = math.tanh %211 : vector<16x128xf32>
    %213 = arith.mulf %208, %212 : vector<16x128xf32>
    %214 = arith.truncf %213 : vector<16x128xf32> to vector<16x128xbf16>
    %cst_53 = arith.constant dense<0.000000e+00> : vector<16x640xf32>
    %215 = tpu.matmul %214, %8, %cst_53 {dimension_numbers = #tpu.dot_dimension_numbers<[1], [0], [0], [1], [0, 0, 1, 1], [], []>} : vector<16x128xbf16>, vector<128x640xbf16>, vector<16x640xf32> -> vector<16x640xf32>
    %216 = vector.extract_strided_slice %215 {offsets = [0, 512], sizes = [16, 128], strides = [1, 1]} : vector<16x640xf32> to vector<16x128xf32>
    %217 = arith.addf %216, %11 : vector<16x128xf32>
    %218 = arith.truncf %217 : vector<16x128xf32> to vector<16x128xbf16>
    %c0_54 = arith.constant 0 : index
    %c640 = arith.constant 640 : index
    %219 = vector.load %arg8[%c0_54, %c640] : memref<16x1024xbf16, #tpu.memory_space<vmem>>, vector<16x128xbf16>
    tpu.vector_store %arg8[%c0_54, %c640], %218 {strides = array<i32>} : memref<16x1024xbf16, #tpu.memory_space<vmem>>, vector<16x128xbf16>,
    %c96 = arith.constant 96 : index
    %c0_55 = arith.constant 0 : index
    %220 = vector.load %arg11[%c96, %c0_55] : memref<128x512xf32, #tpu.memory_space<vmem>>, vector<16x512xf32>
    %221 = vector.extract_strided_slice %215 {offsets = [0, 0], sizes = [16, 512], strides = [1, 1]} : vector<16x640xf32> to vector<16x512xf32>
    %222 = arith.addf %220, %221 : vector<16x512xf32>
    %223 = vector.extract_strided_slice %222 {offsets = [0, 0], sizes = [16, 128], strides = [1, 1]} : vector<16x512xf32> to vector<16x128xf32>
    %224 = arith.negf %223 : vector<16x128xf32>
    %225 = math.exp %224 : vector<16x128xf32>
    %cst_56 = arith.constant 1.000000e+00 : f32
    %226 = vector.broadcast %cst_56 : f32 to vector<16x128xf32>
    %227 = arith.addf %226, %225 : vector<16x128xf32>
    %228 = arith.divf %226, %227 : vector<16x128xf32>
    %229 = vector.extract_strided_slice %222 {offsets = [0, 128], sizes = [16, 128], strides = [1, 1]} : vector<16x512xf32> to vector<16x128xf32>
    %230 = arith.negf %229 : vector<16x128xf32>
    %231 = math.exp %230 : vector<16x128xf32>
    %cst_57 = arith.constant 1.000000e+00 : f32
    %232 = vector.broadcast %cst_57 : f32 to vector<16x128xf32>
    %233 = arith.addf %232, %231 : vector<16x128xf32>
    %234 = arith.divf %232, %233 : vector<16x128xf32>
    %235 = vector.extract_strided_slice %222 {offsets = [0, 256], sizes = [16, 128], strides = [1, 1]} : vector<16x512xf32> to vector<16x128xf32>
    %236 = math.tanh %235 : vector<16x128xf32>
    %237 = vector.extract_strided_slice %222 {offsets = [0, 384], sizes = [16, 128], strides = [1, 1]} : vector<16x512xf32> to vector<16x128xf32>
    %238 = arith.negf %237 : vector<16x128xf32>
    %239 = math.exp %238 : vector<16x128xf32>
    %cst_58 = arith.constant 1.000000e+00 : f32
    %240 = vector.broadcast %cst_58 : f32 to vector<16x128xf32>
    %241 = arith.addf %240, %239 : vector<16x128xf32>
    %242 = arith.divf %240, %241 : vector<16x128xf32>
    %243 = arith.mulf %234, %211 : vector<16x128xf32>
    %244 = arith.mulf %228, %236 : vector<16x128xf32>
    %245 = arith.addf %243, %244 : vector<16x128xf32>
    %246 = math.tanh %245 : vector<16x128xf32>
    %247 = arith.mulf %242, %246 : vector<16x128xf32>
    %248 = arith.truncf %247 : vector<16x128xf32> to vector<16x128xbf16>
    %cst_59 = arith.constant dense<0.000000e+00> : vector<16x640xf32>
    %249 = tpu.matmul %248, %8, %cst_59 {dimension_numbers = #tpu.dot_dimension_numbers<[1], [0], [0], [1], [0, 0, 1, 1], [], []>} : vector<16x128xbf16>, vector<128x640xbf16>, vector<16x640xf32> -> vector<16x640xf32>
    %250 = vector.extract_strided_slice %249 {offsets = [0, 512], sizes = [16, 128], strides = [1, 1]} : vector<16x640xf32> to vector<16x128xf32>
    %251 = arith.addf %250, %11 : vector<16x128xf32>
    %252 = arith.truncf %251 : vector<16x128xf32> to vector<16x128xbf16>
    %c0_60 = arith.constant 0 : index
    %c768 = arith.constant 768 : index
    %253 = vector.load %arg8[%c0_60, %c768] : memref<16x1024xbf16, #tpu.memory_space<vmem>>, vector<16x128xbf16>
    tpu.vector_store %arg8[%c0_60, %c768], %252 {strides = array<i32>} : memref<16x1024xbf16, #tpu.memory_space<vmem>>, vector<16x128xbf16>,
    %c112 = arith.constant 112 : index
    %c0_61 = arith.constant 0 : index
    %254 = vector.load %arg11[%c112, %c0_61] : memref<128x512xf32, #tpu.memory_space<vmem>>, vector<16x512xf32>
    %255 = vector.extract_strided_slice %249 {offsets = [0, 0], sizes = [16, 512], strides = [1, 1]} : vector<16x640xf32> to vector<16x512xf32>
    %256 = arith.addf %254, %255 : vector<16x512xf32>
    %257 = vector.extract_strided_slice %256 {offsets = [0, 0], sizes = [16, 128], strides = [1, 1]} : vector<16x512xf32> to vector<16x128xf32>
    %258 = arith.negf %257 : vector<16x128xf32>
    %259 = math.exp %258 : vector<16x128xf32>
    %cst_62 = arith.constant 1.000000e+00 : f32
    %260 = vector.broadcast %cst_62 : f32 to vector<16x128xf32>
    %261 = arith.addf %260, %259 : vector<16x128xf32>
    %262 = arith.divf %260, %261 : vector<16x128xf32>
    %263 = vector.extract_strided_slice %256 {offsets = [0, 128], sizes = [16, 128], strides = [1, 1]} : vector<16x512xf32> to vector<16x128xf32>
    %264 = arith.negf %263 : vector<16x128xf32>
    %265 = math.exp %264 : vector<16x128xf32>
    %cst_63 = arith.constant 1.000000e+00 : f32
    %266 = vector.broadcast %cst_63 : f32 to vector<16x128xf32>
    %267 = arith.addf %266, %265 : vector<16x128xf32>
    %268 = arith.divf %266, %267 : vector<16x128xf32>
    %269 = vector.extract_strided_slice %256 {offsets = [0, 256], sizes = [16, 128], strides = [1, 1]} : vector<16x512xf32> to vector<16x128xf32>
    %270 = math.tanh %269 : vector<16x128xf32>
    %271 = vector.extract_strided_slice %256 {offsets = [0, 384], sizes = [16, 128], strides = [1, 1]} : vector<16x512xf32> to vector<16x128xf32>
    %272 = arith.negf %271 : vector<16x128xf32>
    %273 = math.exp %272 : vector<16x128xf32>
    %cst_64 = arith.constant 1.000000e+00 : f32
    %274 = vector.broadcast %cst_64 : f32 to vector<16x128xf32>
    %275 = arith.addf %274, %273 : vector<16x128xf32>
    %276 = arith.divf %274, %275 : vector<16x128xf32>
    %277 = arith.mulf %268, %245 : vector<16x128xf32>
    %278 = arith.mulf %262, %270 : vector<16x128xf32>
    %279 = arith.addf %277, %278 : vector<16x128xf32>
    %280 = math.tanh %279 : vector<16x128xf32>
    %281 = arith.mulf %276, %280 : vector<16x128xf32>
    %282 = arith.truncf %281 : vector<16x128xf32> to vector<16x128xbf16>
    %cst_65 = arith.constant dense<0.000000e+00> : vector<16x640xf32>
    %283 = tpu.matmul %282, %8, %cst_65 {dimension_numbers = #tpu.dot_dimension_numbers<[1], [0], [0], [1], [0, 0, 1, 1], [], []>} : vector<16x128xbf16>, vector<128x640xbf16>, vector<16x640xf32> -> vector<16x640xf32>
    %284 = vector.extract_strided_slice %283 {offsets = [0, 512], sizes = [16, 128], strides = [1, 1]} : vector<16x640xf32> to vector<16x128xf32>
    %285 = arith.addf %284, %11 : vector<16x128xf32>
    %286 = arith.truncf %285 : vector<16x128xf32> to vector<16x128xbf16>
    %c0_66 = arith.constant 0 : index
    %c896 = arith.constant 896 : index
    %287 = vector.load %arg8[%c0_66, %c896] : memref<16x1024xbf16, #tpu.memory_space<vmem>>, vector<16x128xbf16>
    tpu.vector_store %arg8[%c0_66, %c896], %286 {strides = array<i32>} : memref<16x1024xbf16, #tpu.memory_space<vmem>>, vector<16x128xbf16>,
    %c0_67 = arith.constant 0 : index
    %c0_68 = arith.constant 0 : index
    %288 = vector.load %arg9[%c0_67, %c0_68] : memref<16x128xf32, #tpu.memory_space<vmem>>, vector<16x128xf32>
    tpu.vector_store %arg9[%c0_67, %c0_68], %281 {strides = array<i32>} : memref<16x128xf32, #tpu.memory_space<vmem>>, vector<16x128xf32>,
    %c0_69 = arith.constant 0 : index
    %c0_70 = arith.constant 0 : index
    %289 = vector.load %arg10[%c0_69, %c0_70] : memref<16x128xf32, #tpu.memory_space<vmem>>, vector<16x128xf32>
    tpu.vector_store %arg10[%c0_69, %c0_70], %279 {strides = array<i32>} : memref<16x128xf32, #tpu.memory_space<vmem>>, vector<16x128xf32>,
    return
  }
  func.func @transform_0(%arg0: i32) -> (i32, i32, i32) {
    %c0_i32 = arith.constant 0 : i32
    %c0_i32_0 = arith.constant 0 : i32
    %c0_i32_1 = arith.constant 0 : i32
    return %arg0, %c0_i32, %c0_i32_0 : i32, i32, i32
  }
  func.func @transform_1(%arg0: i32) -> (i32, i32) {
    %c0_i32 = arith.constant 0 : i32
    %c0_i32_0 = arith.constant 0 : i32
    %c0_i32_1 = arith.constant 0 : i32
    return %c0_i32, %c0_i32_0 : i32, i32
  }
  func.func @transform_2(%arg0: i32) -> (i32, i32) {
    %c0_i32 = arith.constant 0 : i32
    %c0_i32_0 = arith.constant 0 : i32
    %c0_i32_1 = arith.constant 0 : i32
    return %c0_i32, %c0_i32_0 : i32, i32
  }
  func.func @transform_3(%arg0: i32) -> (i32, i32) {
    %c0_i32 = arith.constant 0 : i32
    %c0_i32_0 = arith.constant 0 : i32
    %c0_i32_1 = arith.constant 0 : i32
    return %c0_i32, %c0_i32_0 : i32, i32
  }
  func.func @transform_4(%arg0: i32) -> (i32, i32) {
    %c0_i32 = arith.constant 0 : i32
    %c0_i32_0 = arith.constant 0 : i32
    %c0_i32_1 = arith.constant 0 : i32
    return %c0_i32, %c0_i32_0 : i32, i32
  }
  func.func @transform_5(%arg0: i32) -> (i32, i32) {
    %c0_i32 = arith.constant 0 : i32
    %c0_i32_0 = arith.constant 0 : i32
    return %arg0, %c0_i32 : i32, i32
  }
  func.func @transform_6(%arg0: i32) -> (i32, i32) {
    %c0_i32 = arith.constant 0 : i32
    %c0_i32_0 = arith.constant 0 : i32
    return %arg0, %c0_i32 : i32, i32
  }
  func.func @transform_7(%arg0: i32) -> (i32, i32) {
    %c0_i32 = arith.constant 0 : i32
    %c0_i32_0 = arith.constant 0 : i32
    return %arg0, %c0_i32 : i32, i32
  }
  func.func @transform_8(%arg0: i32) -> (i32, i32) {
    %c0_i32 = arith.constant 0 : i32
    %c0_i32_0 = arith.constant 0 : i32
    return %arg0, %c0_i32 : i32, i32
  }
  func.func @transform_9(%arg0: i32) -> (i32, i32) {
    %c0_i32 = arith.constant 0 : i32
    %c0_i32_0 = arith.constant 0 : i32
    return %arg0, %c0_i32 : i32, i32
  }
}

</mosaic_0001>

<bundles_post_ra>
// kernel: char_lstm_forward.1
= control target key start
LH: loop header
LB: loop body
LE: loop exit
PB: predicated region body
PF: predicated region fallthrough
CT: control target
= control target key end

     0   :  { %15 = vsyncpa [#allocation4], 0  ;;  %v4650_v2 = vmov 0   ;;  %vm206_vm0 = vcmask 523264   ;;  %s4640_s0 = inlined_call_operand.vmem [shape: bf16[1,128,64], index: 0, kind: input, shape index: {}]   ;;  %s4641_s1 = inlined_call_operand.vmem [shape: bf16[64,512], index: 1, kind: input, shape index: {}]   ;;  %s4642_s2 = inlined_call_operand.vmem [shape: bf16[128,640], index: 2, kind: input, shape index: {}]   ;;  %s4643_s3 = inlined_call_operand.vmem [shape: f32[1,512], index: 3, kind: input, shape index: {}]   ;;  %s4644_s4 = inlined_call_operand.vmem [shape: f32[1,128], index: 4, kind: input, shape index: {}]   ;;  %s4645_s5 = inlined_call_operand.vmem [shape: f32[16,128], index: 5, kind: input, shape index: {}, may-alias: {5,6}]   ;;  %s4646_s6 = inlined_call_operand.vmem [shape: f32[16,128], index: 6, kind: input, shape index: {}, may-alias: {5,6}]   ;;  %s4647_s7 = inlined_call_operand.vmem [shape: bf16[16,1024], index: 7, kind: output, shape index: {0}]   ;;  %s4648_s8 = inlined_call_operand.hbm [shape: f32[16,128], index: 8, kind: output, shape index: {1}]   ;;  %s4649_s9 = inlined_call_operand.hbm [shape: f32[16,128], index: 9, kind: output, shape index: {2}]  }
   0x1   :  { %v2989_v0 = vld [vmem:[%s4641_s1 + $0x4] ss:$16 sps:$4 sm:$0xff]   ;;  %v2991_v1 = vld [vmem:[%s4641_s1 + $0xc] ss:$16 sps:$4 sm:$0xff]   ;;  %263 = vmatprep.mubr.bf16.mxu0 %v4650_v2  ;;  %376 = vmatprep.mubr.bf16.mxu1 %v4650_v2  ;;  %v2993_v3 = vld [vmem:[%s4641_s1] ss:$16 sps:$4 sm:$0xff]  }
   0x2   :  { %231 = vmatprep.subr.bf16.mxu0 %v2989_v0  ;;  %v2994_v4 = vld [vmem:[%s4641_s1 + $0x8] ss:$16 sps:$4 sm:$0xff]   ;;  %344 = vmatprep.subr.bf16.mxu1 %v2991_v1  ;;  %v2995_v5 = vld [vmem:[%s4641_s1 + $0x24] ss:$16 sps:$4 sm:$0xff]   ;;  %v2997_v6 = vld [vmem:[%s4641_s1 + $0x2c] ss:$16 sps:$4 sm:$0xff]  }
   0x3   :  { %232 = vmatpush1.bf16.msra.mxu0 %v2993_v3  ;;  %345 = vmatpush1.bf16.msra.mxu1 %v2994_v4  ;;  %v2999_v7 = vld [vmem:[%s4641_s1 + $0x20] ss:$16 sps:$4 sm:$0xff]   ;;  %v3000_v8 = vld [vmem:[%s4641_s1 + $0x28] ss:$16 sps:$4 sm:$0xff]   ;;  %v3001_v9 = vld [vmem:[%s4641_s1 + $0x44] ss:$16 sps:$4 sm:$0xff]  }
   0x4   :  { %233 = vmatprep.subr.bf16.mxu0 %v2995_v5  ;;  %346 = vmatprep.subr.bf16.mxu1 %v2997_v6  ;;  %v3003_v10 = vld [vmem:[%s4641_s1 + $0x4c] ss:$16 sps:$4 sm:$0xff]   ;;  %v3005_v11 = vld [vmem:[%s4641_s1 + $0x40] ss:$16 sps:$4 sm:$0xff]   ;;  %v3006_v12 = vld [vmem:[%s4641_s1 + $0x48] ss:$16 sps:$4 sm:$0xff]  }
   0x5   :  { %v3007_v13 = vld [vmem:[%s4641_s1 + $0x64] ss:$16 sps:$4 sm:$0xff]   ;;  %v3009_v14 = vld [vmem:[%s4641_s1 + $0x6c] ss:$16 sps:$4 sm:$0xff]   ;;  %v3011_v15 = vld [vmem:[%s4641_s1 + $0x60] ss:$16 sps:$4 sm:$0xff]  }
   0x6   :  { %v3012_v16 = vld [vmem:[%s4641_s1 + $0x68] ss:$16 sps:$4 sm:$0xff]   ;;  %v3013_v18 = vld [vmem:[%s4640_s0] sm:$0xff]   ;;  %v3600_v29 = vld [vmem:[%s4642_s2 + $0x7c] ss:$20 sps:$4 sm:$0xff]  }
   0x7   :  { %234 = vmatpush1.bf16.msra.mxu0 %v2999_v7  ;;  %347 = vmatpush1.bf16.msra.mxu1 %v3000_v8  ;;  %v3532_v17 = vld [vmem:[%s4642_s2 + $0x4] ss:$20 sps:$4 sm:$0xff]   ;;  %v3540_v19 = vld [vmem:[%s4642_s2] ss:$20 sps:$4 sm:$0xff]   ;;  %v3557_v22 = vld [vmem:[%s4642_s2 + $0x8] ss:$20 sps:$4 sm:$0xff]  }
   0x8   :  { %235 = vmatprep.subr.bf16.mxu0 %v3001_v9  ;;  %348 = vmatprep.subr.bf16.mxu1 %v3003_v10  ;;  %v3545_v20 = vld [vmem:[%s4642_s2 + $0xc] ss:$20 sps:$4 sm:$0xff]   ;;  %v3564_v23 = vld [vmem:[%s4642_s2 + $0x34] ss:$20 sps:$4 sm:$0xff]   ;;  %v3584_v26 = vld [vmem:[%s4642_s2 + $0x30] ss:$20 sps:$4 sm:$0xff]  }
   0x9   :  { %v3551_v21 = vld [vmem:[%s4642_s2 + $0x2c] ss:$20 sps:$4 sm:$0xff]   ;;  %v3571_v24 = vld [vmem:[%s4642_s2 + $0x28] ss:$20 sps:$4 sm:$0xff]   ;;  %v3594_v28 = vld [vmem:[%s4642_s2 + $0x50] ss:$20 sps:$4 sm:$0xff]  }
   0xa   :  { %v3578_v25 = vld [vmem:[%s4642_s2 + $0x54] ss:$20 sps:$4 sm:$0xff]   ;;  %v3605_v30 = vld [vmem:[%s4642_s2 + $0x5c] ss:$20 sps:$4 sm:$0xff]   ;;  %v3611_v31 = vld [vmem:[%s4642_s2 + $0x58] ss:$20 sps:$4 sm:$0xff]  }
   0xb   :  { %236 = vmatpush1.bf16.msra.mxu0 %v3005_v11  ;;  %349 = vmatpush1.bf16.msra.mxu1 %v3006_v12  ;;  %v3017_v27 = vld [vmem:[%s4640_s0 + $0x8] sm:$0xff]   ;;  %v3618_v32 = vld [vmem:[%s4642_s2 + $0x84] ss:$20 sps:$4 sm:$0xff]   ;;  %v3639_v35 = vld [vmem:[%s4642_s2 + $0x80] ss:$20 sps:$4 sm:$0xff]  }
   0xc   :  { %237 = vmatprep.subr.bf16.mxu0 %v3007_v13  ;;  %350 = vmatprep.subr.bf16.mxu1 %v3009_v14  ;;  %v3626_v33 = vld [vmem:[%s4642_s2 + $0x78] ss:$20 sps:$4 sm:$0xff]   ;;  %v3023_v36 = vld [vmem:[%s4640_s0 + $0x10] sm:$0xff]   ;;  %v3666_v40 = vld [vmem:[%s4642_s2 + $0xa8] ss:$20 sps:$4 sm:$0xff]  }
   0xd   :  { %v3632_v34 = vld [vmem:[%s4642_s2 + $0xa4] ss:$20 sps:$4 sm:$0xff]   ;;  %v3649_v37 = vld [vmem:[%s4642_s2 + $0xa0] ss:$20 sps:$4 sm:$0xff]   ;;  %v3681_v42 = vld [vmem:[%s4642_s2 + $0xc8] ss:$20 sps:$4 sm:$0xff]  }
   0xe   :  { %v3654_v38 = vld [vmem:[%s4642_s2 + $0xac] ss:$20 sps:$4 sm:$0xff]   ;;  %v3673_v41 = vld [vmem:[%s4642_s2 + $0xd4] ss:$20 sps:$4 sm:$0xff]   ;;  %v3694_v44 = vld [vmem:[%s4642_s2 + $0xd0] ss:$20 sps:$4 sm:$0xff]  }
   0xf   :  { %238 = vmatpush1.bf16.msra.mxu0 %v3011_v15  ;;  %351 = vmatpush1.bf16.msra.mxu1 %v3012_v16  ;;  %v3660_v39 = vld [vmem:[%s4642_s2 + $0xcc] ss:$20 sps:$4 sm:$0xff]   ;;  %v3688_v43 = vld [vmem:[%s4642_s2 + $0xf4] ss:$20 sps:$4 sm:$0xff]   ;;  %v3030_v45 = vld [vmem:[%s4640_s0 + $0x18] sm:$0xff]  }
  0x10   :  { %741 = vmatprep.subr.bf16.mxu0 %v3532_v17  ;;  %784 = vmatprep.subr.bf16.mxu1 %v3545_v20  ;;  %v3702_v46 = vld [vmem:[%s4642_s2 + $0xf0] ss:$20 sps:$4 sm:$0xff]   ;;  %v3718_v49 = vld [vmem:[%s4642_s2 + $0xf8] ss:$20 sps:$4 sm:$0xff]   ;;  %v3744_v52 = vld [vmem:[%s4642_s2 + $0x120] ss:$20 sps:$4 sm:$0xff]  }
  0x11   :  { %v3708_v47 = vld [vmem:[%s4642_s2 + $0x11c] ss:$20 sps:$4 sm:$0xff]   ;;  %v3724_v50 = vld [vmem:[%s4642_s2 + $0x124] ss:$20 sps:$4 sm:$0xff]  }
  0x12   :  { %2485 = vmatmul.mubr.msk.bf16.vlgmr.msra.gmra.mrb[0].mxu0 %vm206_vm0, %v3013_v18  ;;  %2493 = vmatmul.mubr.msk.bf16.vlgmr.msra.gmra.mrb[0].mxu1 %vm206_vm0, %v3013_v18  ;;  %v3713_v48 = vld [vmem:[%s4642_s2 + $0xfc] ss:$20 sps:$4 sm:$0xff]   ;;  %v3733_v51 = vld [vmem:[%s4642_s2 + $0x118] ss:$20 sps:$4 sm:$0xff]  }
  0x13   :  { %742 = vmatpush1.bf16.msra.mxu0 %v3540_v19  ;;  %273 = vmatprep.mubr.bf16.mxu0 %v4650_v2 }
  0x14   :  { %386 = vmatprep.mubr.bf16.mxu1 %v4650_v2  ;;  %743 = vmatprep.subr.bf16.mxu0 %v3551_v21 }
  0x15   :  { %785 = vmatpush1.bf16.msra.mxu1 %v3557_v22 }
  0x16   :  { %786 = vmatprep.subr.bf16.mxu1 %v3564_v23 }
  0x17   :  { %744 = vmatpush1.bf16.msra.mxu0 %v3571_v24 }
  0x18   :  { %745 = vmatprep.subr.bf16.mxu0 %v3578_v25 }
  0x19   :  { %787 = vmatpush1.bf16.msra.mxu1 %v3584_v26 }
  0x1a   :  { %2486 = vmatmul.mubr.msk.bf16.gmra.mrb[4].mxu0 %vm206_vm0, %v3017_v27  ;;  %2494 = vmatmul.mubr.msk.bf16.gmra.mrb[4].mxu1 %vm206_vm0, %v3017_v27 }
  0x1b   :  { %283 = vmatprep.mubr.bf16.mxu0 %v4650_v2  ;;  %396 = vmatprep.mubr.bf16.mxu1 %v4650_v2 }
  0x1c   :  { %746 = vmatpush1.bf16.msra.mxu0 %v3594_v28  ;;  %788 = vmatprep.subr.bf16.mxu1 %v3605_v30 }
  0x1d   :  { %747 = vmatprep.subr.bf16.mxu0 %v3600_v29  ;;  %789 = vmatpush1.bf16.msra.mxu1 %v3611_v31 }
  0x1e   :  { %790 = vmatprep.subr.bf16.mxu1 %v3618_v32 }
  0x20   :  { %748 = vmatpush1.bf16.msra.mxu0 %v3626_v33 }
  0x21   :  { %749 = vmatprep.subr.bf16.mxu0 %v3632_v34  ;;  %791 = vmatpush1.bf16.msra.mxu1 %v3639_v35 }
  0x22   :  { %2487 = vmatmul.mubr.msk.bf16.gmra.mrb[8].mxu0 %vm206_vm0, %v3023_v36  ;;  %2495 = vmatmul.mubr.msk.bf16.gmra.mrb[8].mxu1 %vm206_vm0, %v3023_v36 }
  0x23   :  { %293 = vmatprep.mubr.bf16.mxu0 %v4650_v2  ;;  %406 = vmatprep.mubr.bf16.mxu1 %v4650_v2 }
  0x24   :  { %750 = vmatpush1.bf16.msra.mxu0 %v3649_v37  ;;  %792 = vmatprep.subr.bf16.mxu1 %v3654_v38 }
  0x25   :  { %751 = vmatprep.subr.bf16.mxu0 %v3660_v39  ;;  %793 = vmatpush1.bf16.msra.mxu1 %v3666_v40 }
  0x26   :  { %794 = vmatprep.subr.bf16.mxu1 %v3673_v41 }
  0x28   :  { %752 = vmatpush1.bf16.msra.mxu0 %v3681_v42 }
  0x29   :  { %753 = vmatprep.subr.bf16.mxu0 %v3688_v43  ;;  %795 = vmatpush1.bf16.msra.mxu1 %v3694_v44 }
  0x2a   :  { %2488 = vmatmul.mubr.msk.bf16.gmra.mrb[12].mxu0 %vm206_vm0, %v3030_v45  ;;  %2496 = vmatmul.mubr.msk.bf16.gmra.mrb[12].mxu1 %vm206_vm0, %v3030_v45 }
  0x2b   :  { %303 = vmatprep.mubr.bf16.mxu0 %v4650_v2  ;;  %416 = vmatprep.mubr.bf16.mxu1 %v4650_v2 }
  0x2c   :  { %754 = vmatpush1.bf16.msra.mxu0 %v3702_v46  ;;  %796 = vmatprep.subr.bf16.mxu1 %v3713_v48 }
  0x2d   :  { %755 = vmatprep.subr.bf16.mxu0 %v3708_v47  ;;  %797 = vmatpush1.bf16.msra.mxu1 %v3718_v49 }
  0x2e   :  { %16 = vsyncpa [#allocation6], 0  ;;  %v3037_v53 = vld [vmem:[%s4640_s0 + $0x20] sm:$0xff]   ;;  %798 = vmatprep.subr.bf16.mxu1 %v3724_v50  ;;  %v3044_v54 = vld [vmem:[%s4640_s0 + $0x28] sm:$0xff]   ;;  %v4652_v60 = vmov 0.0   ;;  %v66_v61 = vlaneseq  ;;  %vm3424_vm1 = vmmov 0  }
  0x2f   :  { %v3051_v55 = vld [vmem:[%s4640_s0 + $0x30] sm:$0xff]   ;;  %v3059_v56 = vld [vmem:[%s4640_s0 + $0x38] sm:$0xff]   ;;  %v576_v57 = vld [vmem:[%s4645_s5] sm:$0xff] }
  0x30   :  { %756 = vmatpush1.bf16.msra.mxu0 %v3733_v51  ;;  %v577_v58 = vld [vmem:[%s4645_s5 + $0x8] sm:$0xff]  ;;  %v67_v62 = vshrl.u32 %v66_v61, 7  ;;  %v64_v0 = vld [vmem:[%s4643_s3] sm:$0xf]  ;;  %s3425_s3 = smov [#allocation3]  }
  0x31   :  { %799 = vmatpush1.bf16.msra.mxu1 %v3744_v52  ;;  %940 = vmatprep.subr.bf16.mxu0 %v3532_v17  ;;  %v580_v59 = vpack.c.bf16 %v577_v58, %v576_v57  ;;  %s2432_s16 = sshll.u32 %s3425_s3, 4  ;;  %s2433_s16 = int_to_ptr.vmem [resolvable:$true] %s2432_s16 }
  0x32   :  { %2489 = vmatmul.mubr.msk.bf16.gmra.mrb[16].mxu0 %vm206_vm0, %v3037_v53  ;;  %2497 = vmatmul.mubr.msk.bf16.gmra.mrb[16].mxu1 %vm206_vm0, %v3037_v53  ;;  %v68_v63 = vsub.s32 0, %v67_v62  ;;  %v72_v1 = vsub.s32 1, %v67_v62  ;;  %v80_v7 = vsub.s32 3, %v67_v62  ;;  %v76_v15 = vsub.s32 2, %v67_v62  ;;  %s3374_s17 = scalar_lea.vmem %s2433_s16, 256  ;;  %p3379_p1 = scmp.lt.s32.totalorder %s2433_s16, %s2433_s16 }
  0x33   :  { %313 = vmatprep.mubr.bf16.mxu0 %v4650_v2  ;;  %426 = vmatprep.mubr.bf16.mxu1 %v4650_v2  ;;  %p3375_p0 = scmp.ne.s32.totalorder %s2433_s16, %s3374_s17  ;;  %p3380_p2 = scmp.lt.s32.totalorder %s3374_s17, %s3374_s17 }
  0x34   :  { %983 = vmatprep.subr.bf16.mxu1 %v3545_v20  ;;  %v3822_v3 = vrot.slane %v64_v0, %v68_v63  ;;  %v3824_v4 = vrot.slane %v64_v0, %v72_v1  ;;  %v3829_v45 = vrot.slane %v64_v0, %v80_v7 }
  0x35   :  { %p3381_p3 = por %p3380_p2, %p3379_p1 }
  0x36   :  { %4657 = vst [vmem:[#allocation9_spill] sm:$0xff] %v3822_v3 }
  0x37   :  { %p3382_p4 = pnand %p3381_p3, %p3375_p0 }
  0x3a   :  { %2490 = vmatmul.mubr.msk.bf16.gmra.mrb[20].mxu0 %vm206_vm0, %v3044_v54  ;;  %2498 = vmatmul.mubr.msk.bf16.gmra.mrb[20].mxu1 %vm206_vm0, %v3044_v54 }
  0x3b   :  { %323 = vmatprep.mubr.bf16.mxu0 %v4650_v2  ;;  %436 = vmatprep.mubr.bf16.mxu1 %v4650_v2 }
  0x42   :  { %2491 = vmatmul.mubr.msk.bf16.gmra.mrb[24].mxu0 %vm206_vm0, %v3051_v55  ;;  %2499 = vmatmul.mubr.msk.bf16.gmra.mrb[24].mxu1 %vm206_vm0, %v3051_v55 }
  0x43   :  { %333 = vmatprep.mubr.bf16.mxu0 %v4650_v2  ;;  %446 = vmatprep.mubr.bf16.mxu1 %v4650_v2 }
  0x4a   :  { %2492 = vmatmul.mubr.msk.bf16.gmra.mrb[28].mxu0 %vm206_vm0, %v3059_v56  ;;  %2500 = vmatmul.mubr.msk.bf16.gmra.mrb[28].mxu1 %vm206_vm0, %v3059_v56  ;;  %v3832_v56 = vrot.slane %v64_v0, %v76_v15 }
  0x4b   :  { %773 = vmatprep.mubr.bf16.mxu0 %v4650_v2  ;;  %816 = vmatprep.mubr.bf16.mxu1 %v4650_v2 }
  0x52   :  { %774 = vmatmul.mubr.bf16.vlgmr.msra.gmra.mrb[0].mxu0 %v580_v59  ;;  %817 = vmatmul.mubr.bf16.vlgmr.msra.gmra.mrb[0].mxu1 %v580_v59 }
  0x53   :  { %941 = vmatpush1.bf16.msra.mxu0 %v3540_v19  ;;  %984 = vmatpush1.bf16.msra.mxu1 %v3557_v22 }
  0x54   :  { %942 = vmatprep.subr.bf16.mxu0 %v3551_v21  ;;  %985 = vmatprep.subr.bf16.mxu1 %v3564_v23 }
  0x55   :  { %972 = vmatprep.mubr.bf16.mxu0 %v4650_v2  ;;  %1015 = vmatprep.mubr.bf16.mxu1 %v4650_v2 }
  0x57   :  { %943 = vmatpush1.bf16.msra.mxu0 %v3571_v24  ;;  %986 = vmatpush1.bf16.msra.mxu1 %v3584_v26 }
  0x58   :  { %944 = vmatprep.subr.bf16.mxu0 %v3578_v25  ;;  %987 = vmatprep.subr.bf16.mxu1 %v3605_v30 }
  0x5b   :  { %945 = vmatpush1.bf16.msra.mxu0 %v3594_v28  ;;  %988 = vmatpush1.bf16.msra.mxu1 %v3611_v31 }
  0x5c   :  { %946 = vmatprep.subr.bf16.mxu0 %v3600_v29  ;;  %989 = vmatprep.subr.bf16.mxu1 %v3618_v32 }
  0x5f   :  { %947 = vmatpush1.bf16.msra.mxu0 %v3626_v33  ;;  %990 = vmatpush1.bf16.msra.mxu1 %v3639_v35 }
  0x60   :  { %948 = vmatprep.subr.bf16.mxu0 %v3632_v34  ;;  %991 = vmatprep.subr.bf16.mxu1 %v3654_v38 }
  0x63   :  { %949 = vmatpush1.bf16.msra.mxu0 %v3649_v37  ;;  %992 = vmatpush1.bf16.msra.mxu1 %v3666_v40 }
  0x64   :  { %950 = vmatprep.subr.bf16.mxu0 %v3660_v39  ;;  %993 = vmatprep.subr.bf16.mxu1 %v3673_v41 }
  0x67   :  { %951 = vmatpush1.bf16.msra.mxu0 %v3681_v42  ;;  %994 = vmatpush1.bf16.msra.mxu1 %v3694_v44 }
  0x68   :  { %952 = vmatprep.subr.bf16.mxu0 %v3688_v43  ;;  %995 = vmatprep.subr.bf16.mxu1 %v3713_v48 }
  0x6b   :  { %953 = vmatpush1.bf16.msra.mxu0 %v3702_v46  ;;  %996 = vmatpush1.bf16.msra.mxu1 %v3718_v49 }
  0x6c   :  { %954 = vmatprep.subr.bf16.mxu0 %v3708_v47  ;;  %997 = vmatprep.subr.bf16.mxu1 %v3724_v50 }
  0x6f   :  { %955 = vmatpush1.bf16.msra.mxu0 %v3733_v51  ;;  %998 = vmatpush1.bf16.msra.mxu1 %v3744_v52 }
  0x70   :  { %1187 = vmatprep.subr.bf16.mxu1 %v3545_v20  ;;  %2694 = vmatprep.subr.bf16.mxu0 %v4652_v60 }
 0x125   :  { %v775_v5 = vpop.f32.mrb[0].mxu0  ;;  %v818_v6 = vpop.f32.mrb[0].mxu1 }
 0x126   :  { %v2854_v8 = vadd.f32 %v775_v5, %v3822_v3  ;;  %v777_v9 = vpop.f32.mrb[1].mxu0  ;;  %v820_v10 = vpop.f32.mrb[1].mxu1  ;;  %v2886_v58 = vadd.f32 %v818_v6, %v3832_v56 }
 0x127   :  { %v2855_v11 = vadd.f32 %v777_v9, %v3824_v4  ;;  %v779_v12 = vpop.f32.mrb[2].mxu0  ;;  %v822_v13 = vpop.f32.mrb[2].mxu1  ;;  %v2887_v57 = vadd.f32 %v820_v10, %v3829_v45 }
 0x128   :  { %v2534_v14 = vmul.f32 -1.442695, %v2854_v8  ;;  %v2856_v16 = vadd.f32 %v779_v12, %v3822_v3  ;;  %v781_v18 = vpop.f32.mrb[3].mxu0  ;;  %v824_v27 = vpop.f32.mrb[3].mxu1  ;;  %v2888_v62 = vadd.f32 %v822_v13, %v3832_v56 }
 0x129   :  { %v2536_v36 = vmul.f32 -1.442695, %v2855_v11  ;;  %v2857_v53 = vadd.f32 %v781_v18, %v3824_v4  ;;  %v2538_v59 = vmul.f32 -1.442695, %v2887_v57  ;;  %v2889_v61 = vadd.f32 %v824_v27, %v3829_v45 }
 0x12a   :  { %3077 = vpow2.f32 %v2534_v14  ;;  %v2535_v54 = vmul.f32 -1.442695, %v2856_v16  ;;  %v578_v14 = vld [vmem:[%s4646_s6] sm:$0xff] }
 0x12b   :  { %3079 = vpow2.f32 %v2536_v36  ;;  %v2537_v55 = vmul.f32 -1.442695, %v2857_v53  ;;  %v2539_v7 = vmul.f32 -1.442695, %v2889_v61 }
 0x12c   :  { %3081 = vpow2.f32 %v2535_v54 }
 0x12d   :  { %3083 = vpow2.f32 %v2537_v55  ;;  %v579_v55 = vld [vmem:[%s4646_s6 + $0x8] sm:$0xff] }
 0x12e   :  { %3085 = vtanh.f32 %v2886_v58 }
 0x12f   :  { %3087 = vpow2.f32 %v2538_v59 }
 0x130   :  { %3089 = vtanh.f32 %v2888_v62 }
 0x134   :  { %v3078_v63 = vpop.eup %3077 }
 0x135   :  { %v3080_v1 = vpop.eup %3079  ;;  %v849_v5 = vadd.f32 1.0, %v3078_v63 }
 0x136   :  { %v861_v8 = vadd.f32 1.0, %v3080_v1  ;;  %v3082_v0 = vpop.eup %3081 }
 0x137   :  { %3091 = vrcp.f32 %v849_v5  ;;  %v850_v9 = vadd.f32 1.0, %v3082_v0  ;;  %v3084_v10 = vpop.eup %3083 }
 0x138   :  { %3093 = vrcp.f32 %v861_v8  ;;  %v862_v6 = vadd.f32 1.0, %v3084_v10  ;;  %v3086_v11 = vpop.eup %3085  ;;  %v3853_v10 = vld [vmem:[%s4642_s2 + $0x10] ss:$20 sps:$4 sm:$0xff]  }
 0x139   :  { %3095 = vpow2.f32 %v2539_v7  ;;  %v3088_v12 = vpop.eup %3087 }
 0x13a   :  { %3097 = vrcp.f32 %v850_v9  ;;  %v3090_v13 = vpop.eup %3089  ;;  %v875_v54 = vadd.f32 1.0, %v3088_v12  ;;  %v3871_v12 = vld [vmem:[%s4642_s2 + $0x60] ss:$20 sps:$4 sm:$0xff]  }
 0x13b   :  { %3099 = vrcp.f32 %v862_v6 }
 0x13c   :  { %3101 = vrcp.f32 %v875_v54 }
 0x141   :  { %v3092_v15 = vpop.eup %3091 }
 0x142   :  { %v3094_v16 = vpop.eup %3093  ;;  %v883_v18 = vmul.f32 %v3092_v15, %v3086_v11  ;;  %v3859_v11 = vld [vmem:[%s4642_s2 + $0x38] ss:$20 sps:$4 sm:$0xff]  }
 0x143   :  { %v3096_v27 = vpop.eup %3095  ;;  %v881_v36 = vmul.f32 %v3094_v16, %v578_v14  ;;  %v3889_v14 = vld [vmem:[%s4642_s2 + $0xb0] ss:$20 sps:$4 sm:$0xff]   ;;  %v3898_v15 = vld [vmem:[%s4642_s2 + $0xd8] ss:$20 sps:$4 sm:$0xff]   ;;  %v3907_v16 = vld [vmem:[%s4642_s2 + $0x100] ss:$20 sps:$4 sm:$0xff]  }
 0x144   :  { %v3098_v53 = vpop.eup %3097  ;;  %v876_v61 = vadd.f32 1.0, %v3096_v27 }
 0x145   :  { %v3844_v57 = vadd.f32 %v883_v18, %v881_v36  ;;  %v884_v58 = vmul.f32 %v3098_v53, %v3090_v13  ;;  %v3100_v59 = vpop.eup %3099  ;;  %v3880_v13 = vld [vmem:[%s4642_s2 + $0x88] ss:$20 sps:$4 sm:$0xff]  }
 0x146   :  { %v882_v62 = vmul.f32 %v3100_v59, %v579_v55  ;;  %v3102_v1 = vpop.eup %3101  ;;  %v3916_v18 = vld [vmem:[%s4642_s2 + $0x128] ss:$20 sps:$4 sm:$0xff]  }
 0x147   :  { %3103 = vtanh.f32 %v3844_v57 }
 0x148   :  { %v3847_v63 = vadd.f32 %v884_v58, %v882_v62  ;;  %3105 = vrcp.f32 %v876_v61 }
 0x14a   :  { %3107 = vtanh.f32 %v3847_v63 }
 0x151   :  { %v3104_v5 = vpop.eup %3103 }
 0x152   :  { %v3106_v7 = vpop.eup %3105  ;;  %v889_v0 = vmul.f32 %v3104_v5, %v3102_v1 }
 0x154   :  { %v3108_v8 = vpop.eup %3107 }
 0x155   :  { %v890_v9 = vmul.f32 %v3108_v8, %v3106_v7 }
 0x157   :  { %v891_v6 = vpack.c.bf16 %v890_v9, %v889_v0 }
 0x159   :  { %973 = vmatmul.mubr.bf16.vlgmr.msra.gmra.mrb[4].mxu0 %v891_v6  ;;  %1016 = vmatmul.mubr.bf16.vlgmr.msra.gmra.mrb[4].mxu1 %v891_v6 }
 0x15a   :  { %2695 = vmatpush3.bf16.msra.mxu0 %v3853_v10  ;;  %2710 = vmatprep.mubr.msk.bf16.mxu0 %vm3424_vm1, %v4652_v60 }
 0x15b   :  { %2696 = vmatprep.subr.bf16.mxu0 %v4652_v60  ;;  %1188 = vmatpush1.bf16.msra.mxu1 %v3557_v22 }
 0x15c   :  { %1189 = vmatprep.subr.bf16.mxu1 %v3564_v23  ;;  %1219 = vmatprep.mubr.bf16.mxu1 %v4650_v2 }
 0x15e   :  { %2697 = vmatpush3.bf16.msra.mxu0 %v3859_v11 }
 0x15f   :  { %2698 = vmatprep.subr.bf16.mxu0 %v4652_v60  ;;  %1190 = vmatpush1.bf16.msra.mxu1 %v3584_v26 }
 0x160   :  { %1191 = vmatprep.subr.bf16.mxu1 %v3605_v30 }
 0x162   :  { %2699 = vmatpush3.bf16.msra.mxu0 %v3871_v12 }
 0x163   :  { %2700 = vmatprep.subr.bf16.mxu0 %v4652_v60  ;;  %1192 = vmatpush1.bf16.msra.mxu1 %v3611_v31 }
 0x164   :  { %1193 = vmatprep.subr.bf16.mxu1 %v3618_v32 }
 0x166   :  { %2701 = vmatpush3.bf16.msra.mxu0 %v3880_v13 }
 0x167   :  { %2702 = vmatprep.subr.bf16.mxu0 %v4652_v60  ;;  %1194 = vmatpush1.bf16.msra.mxu1 %v3639_v35 }
 0x168   :  { %1195 = vmatprep.subr.bf16.mxu1 %v3654_v38 }
 0x16a   :  { %2703 = vmatpush3.bf16.msra.mxu0 %v3889_v14 }
 0x16b   :  { %2704 = vmatprep.subr.bf16.mxu0 %v4652_v60  ;;  %1196 = vmatpush1.bf16.msra.mxu1 %v3666_v40 }
 0x16c   :  { %1197 = vmatprep.subr.bf16.mxu1 %v3673_v41 }
 0x16e   :  { %2705 = vmatpush3.bf16.msra.mxu0 %v3898_v15 }
 0x16f   :  { %2706 = vmatprep.subr.bf16.mxu0 %v4652_v60  ;;  %1198 = vmatpush1.bf16.msra.mxu1 %v3694_v44 }
 0x170   :  { %1199 = vmatprep.subr.bf16.mxu1 %v3713_v48 }
 0x172   :  { %2707 = vmatpush3.bf16.msra.mxu0 %v3907_v16 }
 0x173   :  { %2708 = vmatprep.subr.bf16.mxu0 %v4652_v60  ;;  %1200 = vmatpush1.bf16.msra.mxu1 %v3718_v49 }
 0x174   :  { %1201 = vmatprep.subr.bf16.mxu1 %v3724_v50 }
 0x176   :  { %2709 = vmatpush3.bf16.msra.mxu0 %v3916_v18 }
 0x177   :  { %1144 = vmatprep.subr.bf16.mxu0 %v3532_v17  ;;  %1202 = vmatpush1.bf16.msra.mxu1 %v3744_v52 }
 0x178   :  { %2714 = vmatprep.subr.bf16.mxu1 %v4652_v60 }
 0x179   :  { %2711 = vmatmul.mubr.bf16.vlgmr.msra.gmra.mrb[32].mxu0 %v891_v6 }
 0x17a   :  { %1145 = vmatpush1.bf16.msra.mxu0 %v3540_v19  ;;  %1176 = vmatprep.mubr.bf16.mxu0 %v4650_v2 }
 0x17b   :  { %1146 = vmatprep.subr.bf16.mxu0 %v3551_v21 }
 0x17e   :  { %1147 = vmatpush1.bf16.msra.mxu0 %v3571_v24 }
 0x17f   :  { %1148 = vmatprep.subr.bf16.mxu0 %v3578_v25 }
 0x182   :  { %1149 = vmatpush1.bf16.msra.mxu0 %v3594_v28 }
 0x183   :  { %1150 = vmatprep.subr.bf16.mxu0 %v3600_v29 }
 0x186   :  { %1151 = vmatpush1.bf16.msra.mxu0 %v3626_v33 }
 0x187   :  { %1152 = vmatprep.subr.bf16.mxu0 %v3632_v34 }
 0x18a   :  { %1153 = vmatpush1.bf16.msra.mxu0 %v3649_v37 }
 0x18b   :  { %1154 = vmatprep.subr.bf16.mxu0 %v3660_v39 }
 0x18e   :  { %1155 = vmatpush1.bf16.msra.mxu0 %v3681_v42 }
 0x18f   :  { %1156 = vmatprep.subr.bf16.mxu0 %v3688_v43 }
 0x192   :  { %1157 = vmatpush1.bf16.msra.mxu0 %v3702_v46 }
 0x193   :  { %1158 = vmatprep.subr.bf16.mxu0 %v3708_v47 }
 0x196   :  { %1159 = vmatpush1.bf16.msra.mxu0 %v3733_v51 }
 0x197   :  { %1348 = vmatprep.subr.bf16.mxu0 %v3532_v17 }
 0x22c   :  { %v974_v27 = vpop.f32.mrb[4].mxu0  ;;  %v1017_v36 = vpop.f32.mrb[4].mxu1 }
 0x22d   :  { %v2858_v53 = vadd.f32 %v974_v27, %v3822_v3  ;;  %v976_v54 = vpop.f32.mrb[5].mxu0  ;;  %v1019_v55 = vpop.f32.mrb[5].mxu1  ;;  %v2890_v27 = vadd.f32 %v1017_v36, %v3832_v56 }
 0x22e   :  { %v2859_v58 = vadd.f32 %v976_v54, %v3824_v4  ;;  %v978_v59 = vpop.f32.mrb[6].mxu0  ;;  %v1021_v61 = vpop.f32.mrb[6].mxu1  ;;  %v2891_v6 = vadd.f32 %v1019_v55, %v3829_v45 }
 0x22f   :  { %v2550_v62 = vmul.f32 -1.442695, %v2858_v53  ;;  %v2860_v1 = vadd.f32 %v978_v59, %v3822_v3  ;;  %v980_v5 = vpop.f32.mrb[7].mxu0  ;;  %v1023_v7 = vpop.f32.mrb[7].mxu1  ;;  %v2892_v59 = vadd.f32 %v1021_v61, %v3832_v56 }
 0x230   :  { %v2552_v8 = vmul.f32 -1.442695, %v2859_v58  ;;  %v2861_v0 = vadd.f32 %v980_v5, %v3824_v4  ;;  %v2554_v54 = vmul.f32 -1.442695, %v2891_v6  ;;  %v2893_v53 = vadd.f32 %v1023_v7, %v3829_v45 }
 0x231   :  { %3109 = vpow2.f32 %v2550_v62  ;;  %v2551_v17 = vmul.f32 -1.442695, %v2860_v1 }
 0x232   :  { %3111 = vpow2.f32 %v2552_v8  ;;  %v2553_v9 = vmul.f32 -1.442695, %v2861_v0  ;;  %v2555_v62 = vmul.f32 -1.442695, %v2893_v53 }
 0x233   :  { %3113 = vpow2.f32 %v2551_v17 }
 0x234   :  { %3115 = vpow2.f32 %v2553_v9 }
 0x235   :  { %3117 = vtanh.f32 %v2890_v27 }
 0x236   :  { %3119 = vpow2.f32 %v2554_v54 }
 0x237   :  { %3121 = vtanh.f32 %v2892_v59 }
 0x23b   :  { %v3110_v2 = vpop.eup %3109 }
 0x23c   :  { %v3112_v58 = vpop.eup %3111  ;;  %v1101_v60 = vadd.f32 1.0, %v3110_v2 }
 0x23d   :  { %v1113_v1 = vadd.f32 1.0, %v3112_v58  ;;  %v3114_v5 = vpop.eup %3113 }
 0x23e   :  { %3123 = vrcp.f32 %v1101_v60  ;;  %v1102_v55 = vadd.f32 1.0, %v3114_v5  ;;  %v3116_v8 = vpop.eup %3115  ;;  %v3954_v60 = vld [vmem:[%s4644_s4] ss:$0 sm:$0xff] }
 0x23f   :  { %3125 = vrcp.f32 %v1113_v1  ;;  %v1114_v36 = vadd.f32 1.0, %v3116_v8  ;;  %v3118_v7 = vpop.eup %3117 }
 0x240   :  { %3127 = vpow2.f32 %v2555_v62  ;;  %v3120_v0 = vpop.eup %3119 }
 0x241   :  { %3129 = vrcp.f32 %v1102_v55  ;;  %v3122_v61 = vpop.eup %3121  ;;  %v1127_v53 = vadd.f32 1.0, %v3120_v0 }
 0x242   :  { %3131 = vrcp.f32 %v1114_v36 }
 0x243   :  { %3133 = vrcp.f32 %v1127_v53 }
 0x248   :  { %v3124_v17 = vpop.eup %3123 }
 0x249   :  { %v3126_v9 = vpop.eup %3125  ;;  %v1135_v6 = vmul.f32 %v3124_v17, %v3118_v7 }
 0x24a   :  { %v3128_v2 = vpop.eup %3127  ;;  %v1133_v27 = vmul.f32 %v3126_v9, %v3844_v57 }
 0x24b   :  { %v3130_v54 = vpop.eup %3129  ;;  %v1128_v5 = vadd.f32 1.0, %v3128_v2 }
 0x24c   :  { %v3956_v59 = vadd.f32 %v1135_v6, %v1133_v27  ;;  %v1136_v58 = vmul.f32 %v3130_v54, %v3122_v61  ;;  %v1060_v62 = vpop.f32.mrb[32].mxu0  ;;  %v3132_v1 = vpop.eup %3131 }
 0x24d   :  { %v1067_v55 = vadd.f32 %v3954_v60, %v1060_v62  ;;  %v2712_v8 = vpop.f32.mrb[33].mxu0  ;;  %v1134_v36 = vmul.f32 %v3132_v1, %v3847_v63  ;;  %v3134_v63 = vpop.eup %3133  ;;  %v4658_v62 = vmov 0.0   ;;  %v4659_v1 = vmov 0  }
 0x24e   :  { %v1063_v7 = vpop.f32.mrb[34].mxu0  ;;  %3135 = vtanh.f32 %v3956_v59 }
 0x24f   :  { %v2606_v57 = vpack.c.bf16 %v1067_v55, %v1067_v55  ;;  %v1068_v17 = vadd.f32 %v3954_v60, %v1063_v7  ;;  %v2713_v9 = vpop.f32.mrb[35].mxu0  ;;  %v3962_v0 = vadd.f32 %v1136_v58, %v1134_v36  ;;  %3137 = vrcp.f32 %v1128_v5 }
 0x251   :  { %1077 = vst [vmem:[%s4647_s7] sm:$0xf] %v2606_v57  ;;  %v2607_v61 = vpack.c.bf16 %v1068_v17, %v1068_v17  ;;  %3139 = vtanh.f32 %v3962_v0 }
 0x253   :  { %1078 = vst [vmem:[%s4647_s7 + $0x20] sm:$0xf] %v2607_v61 }
 0x258   :  { %v3136_v6 = vpop.eup %3135 }
 0x259   :  { %v3138_v2 = vpop.eup %3137  ;;  %v1141_v54 = vmul.f32 %v3136_v6, %v3134_v63 }
 0x25b   :  { %v3140_v27 = vpop.eup %3139 }
 0x25c   :  { %v1142_v53 = vmul.f32 %v3140_v27, %v3138_v2 }
 0x25e   :  { %v1143_v58 = vpack.c.bf16 %v1142_v53, %v1141_v54 }
 0x260   :  { %1177 = vmatmul.mubr.bf16.vlgmr.msra.gmra.mrb[8].mxu0 %v1143_v58  ;;  %1220 = vmatmul.mubr.bf16.vlgmr.msra.gmra.mrb[8].mxu1 %v1143_v58 }
 0x261   :  { %2715 = vmatpush3.bf16.msra.mxu1 %v3853_v10  ;;  %2730 = vmatprep.mubr.msk.bf16.mxu1 %vm3424_vm1, %v4658_v62 }
 0x262   :  { %2716 = vmatprep.subr.bf16.mxu1 %v4658_v62  ;;  %1349 = vmatpush1.bf16.msra.mxu0 %v3540_v19 }
 0x263   :  { %1350 = vmatprep.subr.bf16.mxu0 %v3551_v21  ;;  %1380 = vmatprep.mubr.bf16.mxu0 %v4659_v1 }
 0x265   :  { %2717 = vmatpush3.bf16.msra.mxu1 %v3859_v11 }
 0x266   :  { %2718 = vmatprep.subr.bf16.mxu1 %v4658_v62  ;;  %1351 = vmatpush1.bf16.msra.mxu0 %v3571_v24 }
 0x267   :  { %1352 = vmatprep.subr.bf16.mxu0 %v3578_v25 }
 0x269   :  { %2719 = vmatpush3.bf16.msra.mxu1 %v3871_v12 }
 0x26a   :  { %2720 = vmatprep.subr.bf16.mxu1 %v4658_v62  ;;  %1353 = vmatpush1.bf16.msra.mxu0 %v3594_v28 }
 0x26b   :  { %1354 = vmatprep.subr.bf16.mxu0 %v3600_v29 }
 0x26d   :  { %2721 = vmatpush3.bf16.msra.mxu1 %v3880_v13 }
 0x26e   :  { %2722 = vmatprep.subr.bf16.mxu1 %v4658_v62  ;;  %1355 = vmatpush1.bf16.msra.mxu0 %v3626_v33 }
 0x26f   :  { %1356 = vmatprep.subr.bf16.mxu0 %v3632_v34 }
 0x271   :  { %2723 = vmatpush3.bf16.msra.mxu1 %v3889_v14 }
 0x272   :  { %2724 = vmatprep.subr.bf16.mxu1 %v4658_v62  ;;  %1357 = vmatpush1.bf16.msra.mxu0 %v3649_v37 }
 0x273   :  { %1358 = vmatprep.subr.bf16.mxu0 %v3660_v39 }
 0x275   :  { %2725 = vmatpush3.bf16.msra.mxu1 %v3898_v15 }
 0x276   :  { %2726 = vmatprep.subr.bf16.mxu1 %v4658_v62  ;;  %1359 = vmatpush1.bf16.msra.mxu0 %v3681_v42 }
 0x277   :  { %1360 = vmatprep.subr.bf16.mxu0 %v3688_v43 }
 0x279   :  { %2727 = vmatpush3.bf16.msra.mxu1 %v3907_v16 }
 0x27a   :  { %2728 = vmatprep.subr.bf16.mxu1 %v4658_v62  ;;  %1361 = vmatpush1.bf16.msra.mxu0 %v3702_v46 }
 0x27b   :  { %1362 = vmatprep.subr.bf16.mxu0 %v3708_v47 }
 0x27d   :  { %2729 = vmatpush3.bf16.msra.mxu1 %v3916_v18 }
 0x27e   :  { %1391 = vmatprep.subr.bf16.mxu1 %v3545_v20  ;;  %1363 = vmatpush1.bf16.msra.mxu0 %v3733_v51 }
 0x27f   :  { %2734 = vmatprep.subr.bf16.mxu0 %v4658_v62 }
 0x280   :  { %2731 = vmatmul.mubr.bf16.vlgmr.msra.gmra.mrb[32].mxu1 %v1143_v58 }
 0x281   :  { %1392 = vmatpush1.bf16.msra.mxu1 %v3557_v22  ;;  %1423 = vmatprep.mubr.bf16.mxu1 %v4659_v1 }
 0x282   :  { %1393 = vmatprep.subr.bf16.mxu1 %v3564_v23 }
 0x285   :  { %1394 = vmatpush1.bf16.msra.mxu1 %v3584_v26 }
 0x286   :  { %1395 = vmatprep.subr.bf16.mxu1 %v3605_v30 }
 0x289   :  { %1396 = vmatpush1.bf16.msra.mxu1 %v3611_v31 }
 0x28a   :  { %1397 = vmatprep.subr.bf16.mxu1 %v3618_v32 }
 0x28d   :  { %1398 = vmatpush1.bf16.msra.mxu1 %v3639_v35 }
 0x28e   :  { %1399 = vmatprep.subr.bf16.mxu1 %v3654_v38 }
 0x291   :  { %1400 = vmatpush1.bf16.msra.mxu1 %v3666_v40 }
 0x292   :  { %1401 = vmatprep.subr.bf16.mxu1 %v3673_v41 }
 0x295   :  { %1402 = vmatpush1.bf16.msra.mxu1 %v3694_v44 }
 0x296   :  { %1403 = vmatprep.subr.bf16.mxu1 %v3713_v48 }
 0x299   :  { %1404 = vmatpush1.bf16.msra.mxu1 %v3718_v49 }
 0x29a   :  { %1405 = vmatprep.subr.bf16.mxu1 %v3724_v50 }
 0x29d   :  { %1406 = vmatpush1.bf16.msra.mxu1 %v3744_v52 }
 0x29e   :  { %1595 = vmatprep.subr.bf16.mxu1 %v3545_v20 }
 0x333   :  { %v1178_v19 = vpop.f32.mrb[8].mxu0  ;;  %v1221_v21 = vpop.f32.mrb[8].mxu1 }
 0x334   :  { %v2862_v22 = vadd.f32 %v1178_v19, %v3822_v3  ;;  %v1180_v23 = vpop.f32.mrb[9].mxu0  ;;  %v1223_v24 = vpop.f32.mrb[9].mxu1  ;;  %v2894_v39 = vadd.f32 %v1221_v21, %v3832_v56 }
 0x335   :  { %v2863_v25 = vadd.f32 %v1180_v23, %v3824_v4  ;;  %v1182_v26 = vpop.f32.mrb[10].mxu0  ;;  %v1225_v28 = vpop.f32.mrb[10].mxu1  ;;  %v2895_v37 = vadd.f32 %v1223_v24, %v3829_v45 }
 0x336   :  { %v2558_v29 = vmul.f32 -1.442695, %v2862_v22  ;;  %v2864_v30 = vadd.f32 %v1182_v26, %v3822_v3  ;;  %v1184_v31 = vpop.f32.mrb[11].mxu0  ;;  %v1227_v32 = vpop.f32.mrb[11].mxu1  ;;  %v2896_v5 = vadd.f32 %v1225_v28, %v3832_v56 }
 0x337   :  { %v2560_v33 = vmul.f32 -1.442695, %v2863_v25  ;;  %v2865_v34 = vadd.f32 %v1184_v31, %v3824_v4  ;;  %v2562_v42 = vmul.f32 -1.442695, %v2895_v37  ;;  %v2897_v43 = vadd.f32 %v1227_v32, %v3829_v45 }
 0x338   :  { %3141 = vpow2.f32 %v2558_v29  ;;  %v2559_v20 = vmul.f32 -1.442695, %v2864_v30 }
 0x339   :  { %3143 = vpow2.f32 %v2560_v33  ;;  %v2561_v35 = vmul.f32 -1.442695, %v2865_v34  ;;  %v2563_v7 = vmul.f32 -1.442695, %v2897_v43 }
 0x33a   :  { %3145 = vpow2.f32 %v2559_v20 }
 0x33b   :  { %3147 = vpow2.f32 %v2561_v35 }
 0x33c   :  { %3149 = vtanh.f32 %v2894_v39 }
 0x33d   :  { %3151 = vpow2.f32 %v2562_v42 }
 0x33e   :  { %3153 = vtanh.f32 %v2896_v5 }
 0x342   :  { %v3142_v55 = vpop.eup %3141 }
 0x343   :  { %v3144_v8 = vpop.eup %3143  ;;  %v1305_v36 = vadd.f32 1.0, %v3142_v55 }
 0x344   :  { %v1317_v57 = vadd.f32 1.0, %v3144_v8  ;;  %v3146_v17 = vpop.eup %3145 }
 0x345   :  { %3155 = vrcp.f32 %v1305_v36  ;;  %v1306_v9 = vadd.f32 1.0, %v3146_v17  ;;  %v3148_v61 = vpop.eup %3147  ;;  %v4054_v36 = vld [vmem:[%s4642_s2 + $0x8] ss:$20 sps:$4 sm:$0xff]  }
 0x346   :  { %3157 = vrcp.f32 %v1317_v57  ;;  %v1318_v63 = vadd.f32 1.0, %v3148_v61  ;;  %v3150_v6 = vpop.eup %3149  ;;  %v4069_v57 = vld [vmem:[%s4642_s2 + $0x30] ss:$20 sps:$4 sm:$0xff]  }
 0x347   :  { %3159 = vpow2.f32 %v2563_v7  ;;  %v3152_v2 = vpop.eup %3151  ;;  %v4060_v7 = vld [vmem:[%s4642_s2 + $0x34] ss:$20 sps:$4 sm:$0xff]   ;;  %v4075_v17 = vld [vmem:[%s4642_s2 + $0x5c] ss:$20 sps:$4 sm:$0xff]   ;;  %v4089_v61 = vld [vmem:[%s4642_s2 + $0x84] ss:$20 sps:$4 sm:$0xff]  }
 0x348   :  { %3161 = vrcp.f32 %v1306_v9  ;;  %v3154_v27 = vpop.eup %3153  ;;  %v1331_v23 = vadd.f32 1.0, %v3152_v2  ;;  %v4083_v9 = vld [vmem:[%s4642_s2 + $0x58] ss:$20 sps:$4 sm:$0xff]   ;;  %v4174_v2 = vld [vmem:[%s4642_s2 + $0xa0] ss:$20 sps:$4 sm:$0xff]  }
 0x349   :  { %3163 = vrcp.f32 %v1318_v63  ;;  %v4097_v63 = vld [vmem:[%s4642_s2 + $0x80] ss:$20 sps:$4 sm:$0xff]  }
 0x34a   :  { %3165 = vrcp.f32 %v1331_v23 }
 0x34f   :  { %v3156_v54 = vpop.eup %3155 }
 0x350   :  { %v3158_v53 = vpop.eup %3157  ;;  %v1339_v58 = vmul.f32 %v3156_v54, %v3150_v6  ;;  %v4168_v6 = vld [vmem:[%s4642_s2 + $0xa4] ss:$20 sps:$4 sm:$0xff]   ;;  %v4186_v54 = vld [vmem:[%s4642_s2 + $0xc8] ss:$20 sps:$4 sm:$0xff]  }
 0x351   :  { %v3160_v19 = vpop.eup %3159  ;;  %v1337_v21 = vmul.f32 %v3158_v53, %v3956_v59  ;;  %v4192_v53 = vld [vmem:[%s4642_s2 + $0xf4] ss:$20 sps:$4 sm:$0xff]  }
 0x352   :  { %v3162_v22 = vpop.eup %3161  ;;  %v1332_v29 = vadd.f32 1.0, %v3160_v19 }
 0x353   :  { %v4032_v24 = vadd.f32 %v1339_v58, %v1337_v21  ;;  %v1340_v25 = vmul.f32 %v3162_v22, %v3154_v27  ;;  %v1264_v26 = vpop.f32.mrb[32].mxu1  ;;  %v3164_v28 = vpop.eup %3163  ;;  %v4180_v27 = vld [vmem:[%s4642_s2 + $0xcc] ss:$20 sps:$4 sm:$0xff]  }
 0x354   :  { %v1271_v30 = vadd.f32 %v3954_v60, %v1264_v26  ;;  %v2732_v31 = vpop.f32.mrb[33].mxu1  ;;  %v1338_v32 = vmul.f32 %v3164_v28, %v3962_v0  ;;  %v3166_v0 = vpop.eup %3165 }
 0x355   :  { %v1267_v33 = vpop.f32.mrb[34].mxu1  ;;  %3167 = vtanh.f32 %v4032_v24 }
 0x356   :  { %v2608_v34 = vpack.c.bf16 %v1271_v30, %v1271_v30  ;;  %v1272_v20 = vadd.f32 %v3954_v60, %v1267_v33  ;;  %v2733_v35 = vpop.f32.mrb[35].mxu1  ;;  %v4038_v59 = vadd.f32 %v1340_v25, %v1338_v32  ;;  %3169 = vrcp.f32 %v1332_v29 }
 0x358   :  { %1281 = vst [vmem:[%s4647_s7 + $0x4] sm:$0xf] %v2608_v34  ;;  %v2609_v37 = vpack.c.bf16 %v1272_v20, %v1272_v20  ;;  %3171 = vtanh.f32 %v4038_v59 }
 0x35a   :  { %1282 = vst [vmem:[%s4647_s7 + $0x24] sm:$0xf] %v2609_v37 }
 0x35f   :  { %v3168_v39 = vpop.eup %3167 }
 0x360   :  { %v3170_v42 = vpop.eup %3169  ;;  %v1345_v5 = vmul.f32 %v3168_v39, %v3166_v0 }
 0x362   :  { %v3172_v43 = vpop.eup %3171 }
 0x363   :  { %v1346_v55 = vmul.f32 %v3172_v43, %v3170_v42 }
 0x365   :  { %v1347_v8 = vpack.c.bf16 %v1346_v55, %v1345_v5 }
 0x367   :  { %1381 = vmatmul.mubr.bf16.vlgmr.msra.gmra.mrb[12].mxu0 %v1347_v8  ;;  %1424 = vmatmul.mubr.bf16.vlgmr.msra.gmra.mrb[12].mxu1 %v1347_v8 }
 0x368   :  { %2735 = vmatpush3.bf16.msra.mxu0 %v3853_v10  ;;  %2750 = vmatprep.mubr.msk.bf16.mxu0 %vm3424_vm1, %v4658_v62 }
 0x369   :  { %2736 = vmatprep.subr.bf16.mxu0 %v4658_v62  ;;  %1596 = vmatpush1.bf16.msra.mxu1 %v4054_v36 }
 0x36a   :  { %1597 = vmatprep.subr.bf16.mxu1 %v4060_v7  ;;  %1627 = vmatprep.mubr.bf16.mxu1 %v4659_v1 }
 0x36c   :  { %2737 = vmatpush3.bf16.msra.mxu0 %v3859_v11 }
 0x36d   :  { %2738 = vmatprep.subr.bf16.mxu0 %v4658_v62  ;;  %1598 = vmatpush1.bf16.msra.mxu1 %v4069_v57 }
 0x36e   :  { %1599 = vmatprep.subr.bf16.mxu1 %v4075_v17 }
 0x370   :  { %2739 = vmatpush3.bf16.msra.mxu0 %v3871_v12 }
 0x371   :  { %2740 = vmatprep.subr.bf16.mxu0 %v4658_v62  ;;  %1600 = vmatpush1.bf16.msra.mxu1 %v4083_v9 }
 0x372   :  { %1601 = vmatprep.subr.bf16.mxu1 %v4089_v61 }
 0x374   :  { %2741 = vmatpush3.bf16.msra.mxu0 %v3880_v13 }
 0x375   :  { %2742 = vmatprep.subr.bf16.mxu0 %v4658_v62  ;;  %1602 = vmatpush1.bf16.msra.mxu1 %v4097_v63 }
 0x376   :  { %1603 = vmatprep.subr.bf16.mxu1 %v3654_v38  ;;  %v4117_v38 = vld [vmem:[%s4642_s2 + $0x4] ss:$20 sps:$4 sm:$0xff]  }
 0x378   :  { %2743 = vmatpush3.bf16.msra.mxu0 %v3889_v14 }
 0x379   :  { %2744 = vmatprep.subr.bf16.mxu0 %v4658_v62  ;;  %1604 = vmatpush1.bf16.msra.mxu1 %v3666_v40  ;;  %v4125_v40 = vld [vmem:[%s4642_s2] ss:$20 sps:$4 sm:$0xff]  }
 0x37a   :  { %1605 = vmatprep.subr.bf16.mxu1 %v3673_v41  ;;  %v4132_v41 = vld [vmem:[%s4642_s2 + $0x2c] ss:$20 sps:$4 sm:$0xff]  }
 0x37c   :  { %2745 = vmatpush3.bf16.msra.mxu0 %v3898_v15 }
 0x37d   :  { %2746 = vmatprep.subr.bf16.mxu0 %v4658_v62  ;;  %1606 = vmatpush1.bf16.msra.mxu1 %v3694_v44  ;;  %v4138_v44 = vld [vmem:[%s4642_s2 + $0x28] ss:$20 sps:$4 sm:$0xff]  }
 0x37e   :  { %1607 = vmatprep.subr.bf16.mxu1 %v3713_v48  ;;  %v4144_v48 = vld [vmem:[%s4642_s2 + $0x54] ss:$20 sps:$4 sm:$0xff]  }
 0x380   :  { %2747 = vmatpush3.bf16.msra.mxu0 %v3907_v16 }
 0x381   :  { %2748 = vmatprep.subr.bf16.mxu0 %v4658_v62  ;;  %1608 = vmatpush1.bf16.msra.mxu1 %v3718_v49  ;;  %v4150_v49 = vld [vmem:[%s4642_s2 + $0x50] ss:$20 sps:$4 sm:$0xff]  }
 0x382   :  { %1609 = vmatprep.subr.bf16.mxu1 %v3724_v50  ;;  %v4156_v50 = vld [vmem:[%s4642_s2 + $0x7c] ss:$20 sps:$4 sm:$0xff]  }
 0x384   :  { %2749 = vmatpush3.bf16.msra.mxu0 %v3916_v18 }
 0x385   :  { %1552 = vmatprep.subr.bf16.mxu0 %v4117_v38  ;;  %1610 = vmatpush1.bf16.msra.mxu1 %v3744_v52  ;;  %v4162_v52 = vld [vmem:[%s4642_s2 + $0x78] ss:$20 sps:$4 sm:$0xff]  }
 0x386   :  { %2754 = vmatprep.subr.bf16.mxu1 %v4658_v62 }
 0x387   :  { %2751 = vmatmul.mubr.bf16.vlgmr.msra.gmra.mrb[36].mxu0 %v1347_v8 }
 0x388   :  { %1553 = vmatpush1.bf16.msra.mxu0 %v4125_v40  ;;  %1584 = vmatprep.mubr.bf16.mxu0 %v4659_v1 }
 0x389   :  { %1554 = vmatprep.subr.bf16.mxu0 %v4132_v41 }
 0x38c   :  { %1555 = vmatpush1.bf16.msra.mxu0 %v4138_v44 }
 0x38d   :  { %1556 = vmatprep.subr.bf16.mxu0 %v4144_v48 }
 0x390   :  { %1557 = vmatpush1.bf16.msra.mxu0 %v4150_v49 }
 0x391   :  { %1558 = vmatprep.subr.bf16.mxu0 %v4156_v50 }
 0x394   :  { %1559 = vmatpush1.bf16.msra.mxu0 %v4162_v52 }
 0x395   :  { %1560 = vmatprep.subr.bf16.mxu0 %v4168_v6 }
 0x398   :  { %1561 = vmatpush1.bf16.msra.mxu0 %v4174_v2 }
 0x399   :  { %1562 = vmatprep.subr.bf16.mxu0 %v4180_v27 }
 0x39c   :  { %1563 = vmatpush1.bf16.msra.mxu0 %v4186_v54 }
 0x39d   :  { %1564 = vmatprep.subr.bf16.mxu0 %v4192_v53 }
 0x3a0   :  { %1565 = vmatpush1.bf16.msra.mxu0 %v3702_v46 }
 0x3a1   :  { %1566 = vmatprep.subr.bf16.mxu0 %v3708_v47 }
 0x3a4   :  { %1567 = vmatpush1.bf16.msra.mxu0 %v3733_v51 }
 0x3a5   :  { %1756 = vmatprep.subr.bf16.mxu0 %v4117_v38 }
 0x43a   :  { %v1382_v58 = vpop.f32.mrb[12].mxu0  ;;  %v1425_v19 = vpop.f32.mrb[12].mxu1 }
 0x43b   :  { %v2866_v21 = vadd.f32 %v1382_v58, %v3822_v3  ;;  %v1384_v22 = vpop.f32.mrb[13].mxu0  ;;  %v1427_v23 = vpop.f32.mrb[13].mxu1  ;;  %v2898_v20 = vadd.f32 %v1425_v19, %v3832_v56 }
 0x43c   :  { %v2867_v25 = vadd.f32 %v1384_v22, %v3824_v4  ;;  %v1386_v26 = vpop.f32.mrb[14].mxu0  ;;  %v1429_v28 = vpop.f32.mrb[14].mxu1  ;;  %v2899_v34 = vadd.f32 %v1427_v23, %v3829_v45 }
 0x43d   :  { %v2566_v29 = vmul.f32 -1.442695, %v2866_v21  ;;  %v2868_v30 = vadd.f32 %v1386_v26, %v3822_v3  ;;  %v1388_v46 = vpop.f32.mrb[15].mxu0  ;;  %v1431_v31 = vpop.f32.mrb[15].mxu1  ;;  %v2900_v0 = vadd.f32 %v1429_v28, %v3832_v56 }
 0x43e   :  { %v2568_v47 = vmul.f32 -1.442695, %v2867_v25  ;;  %v2869_v51 = vadd.f32 %v1388_v46, %v3824_v4  ;;  %v2570_v35 = vmul.f32 -1.442695, %v2899_v34  ;;  %v2901_v37 = vadd.f32 %v1431_v31, %v3829_v45 }
 0x43f   :  { %3173 = vpow2.f32 %v2566_v29  ;;  %v2567_v32 = vmul.f32 -1.442695, %v2868_v30 }
 0x440   :  { %3175 = vpow2.f32 %v2568_v47  ;;  %v2569_v33 = vmul.f32 -1.442695, %v2869_v51  ;;  %v2571_v5 = vmul.f32 -1.442695, %v2901_v37 }
 0x441   :  { %3177 = vpow2.f32 %v2567_v32 }
 0x442   :  { %3179 = vpow2.f32 %v2569_v33 }
 0x443   :  { %3181 = vtanh.f32 %v2898_v20 }
 0x444   :  { %3183 = vpow2.f32 %v2570_v35 }
 0x445   :  { %3185 = vtanh.f32 %v2900_v0 }
 0x449   :  { %v3174_v39 = vpop.eup %3173 }
 0x44a   :  { %v3176_v42 = vpop.eup %3175  ;;  %v1509_v43 = vadd.f32 1.0, %v3174_v39 }
 0x44b   :  { %v1521_v55 = vadd.f32 1.0, %v3176_v42  ;;  %v3178_v8 = vpop.eup %3177 }
 0x44c   :  { %3187 = vrcp.f32 %v1509_v43  ;;  %v1510_v58 = vadd.f32 1.0, %v3178_v8  ;;  %v3180_v21 = vpop.eup %3179 }
 0x44d   :  { %3189 = vrcp.f32 %v1521_v55  ;;  %v1522_v19 = vadd.f32 1.0, %v3180_v21  ;;  %v3182_v22 = vpop.eup %3181 }
 0x44e   :  { %3191 = vpow2.f32 %v2571_v5  ;;  %v3184_v23 = vpop.eup %3183 }
 0x44f   :  { %3193 = vrcp.f32 %v1510_v58  ;;  %v3186_v25 = vpop.eup %3185  ;;  %v1535_v47 = vadd.f32 1.0, %v3184_v23 }
 0x450   :  { %3195 = vrcp.f32 %v1522_v19 }
 0x451   :  { %3197 = vrcp.f32 %v1535_v47 }
 0x456   :  { %v3188_v26 = vpop.eup %3187 }
 0x457   :  { %v3190_v28 = vpop.eup %3189  ;;  %v1543_v29 = vmul.f32 %v3188_v26, %v3182_v22  ;;  %v4319_v26 = vld [vmem:[%s4642_s2 + $0xf8] ss:$20 sps:$4 sm:$0xff]  }
 0x458   :  { %v3192_v30 = vpop.eup %3191  ;;  %v1541_v46 = vmul.f32 %v3190_v28, %v4032_v24  ;;  %v4325_v28 = vld [vmem:[%s4642_s2 + $0x124] ss:$20 sps:$4 sm:$0xff]  }
 0x459   :  { %v3194_v31 = vpop.eup %3193  ;;  %v1536_v20 = vadd.f32 1.0, %v3192_v30 }
 0x45a   :  { %v4208_v51 = vadd.f32 %v1543_v29, %v1541_v46  ;;  %v1544_v32 = vmul.f32 %v3194_v31, %v3186_v25  ;;  %v1468_v33 = vpop.f32.mrb[36].mxu0  ;;  %v3196_v34 = vpop.eup %3195  ;;  %v4313_v25 = vld [vmem:[%s4642_s2 + $0xfc] ss:$20 sps:$4 sm:$0xff]   ;;  %v4331_v29 = vld [vmem:[%s4642_s2 + $0x120] ss:$20 sps:$4 sm:$0xff]  }
 0x45b   :  { %v1475_v35 = vadd.f32 %v3954_v60, %v1468_v33  ;;  %v2752_v37 = vpop.f32.mrb[37].mxu0  ;;  %v1542_v0 = vmul.f32 %v3196_v34, %v4038_v59  ;;  %v3198_v59 = vpop.eup %3197  ;;  %4660 = vst [vmem:[#allocation10_spill] sm:$0xff] %v4331_v29 }
 0x45c   :  { %v1471_v39 = vpop.f32.mrb[38].mxu0  ;;  %3199 = vtanh.f32 %v4208_v51 }
 0x45d   :  { %v2610_v42 = vpack.c.bf16 %v1475_v35, %v1475_v35  ;;  %v1476_v43 = vadd.f32 %v3954_v60, %v1471_v39  ;;  %v2753_v5 = vpop.f32.mrb[39].mxu0  ;;  %v4214_v24 = vadd.f32 %v1544_v32, %v1542_v0  ;;  %3201 = vrcp.f32 %v1536_v20 }
 0x45f   :  { %1485 = vst [vmem:[%s4647_s7 + $0x8] sm:$0xf] %v2610_v42  ;;  %v2611_v55 = vpack.c.bf16 %v1476_v43, %v1476_v43  ;;  %3203 = vtanh.f32 %v4214_v24 }
 0x461   :  { %1486 = vst [vmem:[%s4647_s7 + $0x28] sm:$0xf] %v2611_v55 }
 0x466   :  { %v3200_v8 = vpop.eup %3199 }
 0x467   :  { %v3202_v58 = vpop.eup %3201  ;;  %v1549_v19 = vmul.f32 %v3200_v8, %v3198_v59 }
 0x469   :  { %v3204_v21 = vpop.eup %3203 }
 0x46a   :  { %v1550_v22 = vmul.f32 %v3204_v21, %v3202_v58 }
 0x46c   :  { %v1551_v23 = vpack.c.bf16 %v1550_v22, %v1549_v19 }
 0x46e   :  { %1585 = vmatmul.mubr.bf16.vlgmr.msra.gmra.mrb[16].mxu0 %v1551_v23  ;;  %1628 = vmatmul.mubr.bf16.vlgmr.msra.gmra.mrb[16].mxu1 %v1551_v23 }
 0x46f   :  { %2755 = vmatpush3.bf16.msra.mxu1 %v3853_v10  ;;  %2770 = vmatprep.mubr.msk.bf16.mxu1 %vm3424_vm1, %v4658_v62  ;;  %v4255_v10 = vld [vmem:[%s4642_s2 + $0xf0] ss:$20 sps:$4 sm:$0xff]  }
 0x470   :  { %2756 = vmatprep.subr.bf16.mxu1 %v4658_v62  ;;  %1757 = vmatpush1.bf16.msra.mxu0 %v4125_v40 }
 0x471   :  { %1758 = vmatprep.subr.bf16.mxu0 %v4132_v41  ;;  %1788 = vmatprep.mubr.bf16.mxu0 %v4659_v1 }
 0x473   :  { %2757 = vmatpush3.bf16.msra.mxu1 %v3859_v11  ;;  %v4261_v11 = vld [vmem:[%s4642_s2 + $0x11c] ss:$20 sps:$4 sm:$0xff]  }
 0x474   :  { %2758 = vmatprep.subr.bf16.mxu1 %v4658_v62  ;;  %1759 = vmatpush1.bf16.msra.mxu0 %v4138_v44 }
 0x475   :  { %1760 = vmatprep.subr.bf16.mxu0 %v4144_v48 }
 0x477   :  { %2759 = vmatpush3.bf16.msra.mxu1 %v3871_v12  ;;  %v4268_v12 = vld [vmem:[%s4642_s2 + $0xc] ss:$20 sps:$4 sm:$0xff]  }
 0x478   :  { %2760 = vmatprep.subr.bf16.mxu1 %v4658_v62  ;;  %1761 = vmatpush1.bf16.msra.mxu0 %v4150_v49 }
 0x479   :  { %1762 = vmatprep.subr.bf16.mxu0 %v4156_v50 }
 0x47b   :  { %2761 = vmatpush3.bf16.msra.mxu1 %v3880_v13  ;;  %v4274_v13 = vld [vmem:[%s4642_s2 + $0x118] ss:$20 sps:$4 sm:$0xff]  }
 0x47c   :  { %2762 = vmatprep.subr.bf16.mxu1 %v4658_v62  ;;  %1763 = vmatpush1.bf16.msra.mxu0 %v4162_v52 }
 0x47d   :  { %1764 = vmatprep.subr.bf16.mxu0 %v4168_v6 }
 0x47f   :  { %2763 = vmatpush3.bf16.msra.mxu1 %v3889_v14  ;;  %v4289_v14 = vld [vmem:[%s4642_s2 + $0xac] ss:$20 sps:$4 sm:$0xff]  }
 0x480   :  { %2764 = vmatprep.subr.bf16.mxu1 %v4658_v62  ;;  %1765 = vmatpush1.bf16.msra.mxu0 %v4174_v2 }
 0x481   :  { %1766 = vmatprep.subr.bf16.mxu0 %v4180_v27 }
 0x483   :  { %2765 = vmatpush3.bf16.msra.mxu1 %v3898_v15  ;;  %v4295_v15 = vld [vmem:[%s4642_s2 + $0xa8] ss:$20 sps:$4 sm:$0xff]  }
 0x484   :  { %2766 = vmatprep.subr.bf16.mxu1 %v4658_v62  ;;  %1767 = vmatpush1.bf16.msra.mxu0 %v4186_v54 }
 0x485   :  { %1768 = vmatprep.subr.bf16.mxu0 %v4192_v53 }
 0x487   :  { %2767 = vmatpush3.bf16.msra.mxu1 %v3907_v16  ;;  %v4301_v16 = vld [vmem:[%s4642_s2 + $0xd4] ss:$20 sps:$4 sm:$0xff]  }
 0x488   :  { %2768 = vmatprep.subr.bf16.mxu1 %v4658_v62  ;;  %1769 = vmatpush1.bf16.msra.mxu0 %v4255_v10 }
 0x489   :  { %1770 = vmatprep.subr.bf16.mxu0 %v4261_v11 }
 0x48b   :  { %2769 = vmatpush3.bf16.msra.mxu1 %v3916_v18  ;;  %v4307_v18 = vld [vmem:[%s4642_s2 + $0xd0] ss:$20 sps:$4 sm:$0xff]  }
 0x48c   :  { %1799 = vmatprep.subr.bf16.mxu1 %v4268_v12  ;;  %1771 = vmatpush1.bf16.msra.mxu0 %v4274_v13 }
 0x48d   :  { %2774 = vmatprep.subr.bf16.mxu0 %v4658_v62 }
 0x48e   :  { %2771 = vmatmul.mubr.bf16.vlgmr.msra.gmra.mrb[36].mxu1 %v1551_v23 }
 0x48f   :  { %1800 = vmatpush1.bf16.msra.mxu1 %v4054_v36  ;;  %1831 = vmatprep.mubr.bf16.mxu1 %v4659_v1 }
 0x490   :  { %1801 = vmatprep.subr.bf16.mxu1 %v4060_v7 }
 0x493   :  { %1802 = vmatpush1.bf16.msra.mxu1 %v4069_v57 }
 0x494   :  { %1803 = vmatprep.subr.bf16.mxu1 %v4075_v17 }
 0x497   :  { %1804 = vmatpush1.bf16.msra.mxu1 %v4083_v9 }
 0x498   :  { %1805 = vmatprep.subr.bf16.mxu1 %v4089_v61 }
 0x49b   :  { %1806 = vmatpush1.bf16.msra.mxu1 %v4097_v63 }
 0x49c   :  { %1807 = vmatprep.subr.bf16.mxu1 %v4289_v14 }
 0x49f   :  { %1808 = vmatpush1.bf16.msra.mxu1 %v4295_v15 }
 0x4a0   :  { %1809 = vmatprep.subr.bf16.mxu1 %v4301_v16 }
 0x4a3   :  { %1810 = vmatpush1.bf16.msra.mxu1 %v4307_v18 }
 0x4a4   :  { %1811 = vmatprep.subr.bf16.mxu1 %v4313_v25 }
 0x4a7   :  { %1812 = vmatpush1.bf16.msra.mxu1 %v4319_v26 }
 0x4a8   :  { %1813 = vmatprep.subr.bf16.mxu1 %v4325_v28 }
 0x4ab   :  { %1814 = vmatpush1.bf16.msra.mxu1 %v4331_v29 }
 0x4ac   :  { %2003 = vmatprep.subr.bf16.mxu1 %v4268_v12 }
 0x541   :  { %v1586_v30 = vpop.f32.mrb[16].mxu0  ;;  %v1629_v46 = vpop.f32.mrb[16].mxu1 }
 0x542   :  { %v2870_v31 = vadd.f32 %v1586_v30, %v3822_v3  ;;  %v1588_v47 = vpop.f32.mrb[17].mxu0  ;;  %v1631_v32 = vpop.f32.mrb[17].mxu1  ;;  %v2902_v8 = vadd.f32 %v1629_v46, %v3832_v56 }
 0x543   :  { %v2871_v33 = vadd.f32 %v1588_v47, %v3824_v4  ;;  %v1590_v34 = vpop.f32.mrb[18].mxu0  ;;  %v1633_v20 = vpop.f32.mrb[18].mxu1  ;;  %v2903_v59 = vadd.f32 %v1631_v32, %v3829_v45 }
 0x544   :  { %v2574_v35 = vmul.f32 -1.442695, %v2870_v31  ;;  %v2872_v37 = vadd.f32 %v1590_v34, %v3822_v3  ;;  %v1592_v0 = vpop.f32.mrb[19].mxu0  ;;  %v1635_v39 = vpop.f32.mrb[19].mxu1  ;;  %v2904_v19 = vadd.f32 %v1633_v20, %v3832_v56 }
 0x545   :  { %v2576_v42 = vmul.f32 -1.442695, %v2871_v33  ;;  %v2873_v43 = vadd.f32 %v1592_v0, %v3824_v4  ;;  %v2578_v58 = vmul.f32 -1.442695, %v2903_v59  ;;  %v2905_v21 = vadd.f32 %v1635_v39, %v3829_v45 }
 0x546   :  { %3205 = vpow2.f32 %v2574_v35  ;;  %v2575_v5 = vmul.f32 -1.442695, %v2872_v37 }
 0x547   :  { %3207 = vpow2.f32 %v2576_v42  ;;  %v2577_v55 = vmul.f32 -1.442695, %v2873_v43  ;;  %v2579_v31 = vmul.f32 -1.442695, %v2905_v21 }
 0x548   :  { %3209 = vpow2.f32 %v2575_v5 }
 0x549   :  { %3211 = vpow2.f32 %v2577_v55 }
 0x54a   :  { %3213 = vtanh.f32 %v2902_v8 }
 0x54b   :  { %3215 = vpow2.f32 %v2578_v58 }
 0x54c   :  { %3217 = vtanh.f32 %v2904_v19 }
 0x550   :  { %v3206_v22 = vpop.eup %3205 }
 0x551   :  { %v3208_v23 = vpop.eup %3207  ;;  %v1713_v30 = vadd.f32 1.0, %v3206_v22 }
 0x552   :  { %v1725_v47 = vadd.f32 1.0, %v3208_v23  ;;  %v3210_v33 = vpop.eup %3209 }
 0x553   :  { %3219 = vrcp.f32 %v1713_v30  ;;  %v1714_v32 = vadd.f32 1.0, %v3210_v33  ;;  %v3212_v34 = vpop.eup %3211 }
 0x554   :  { %3221 = vrcp.f32 %v1725_v47  ;;  %v1726_v46 = vadd.f32 1.0, %v3212_v34  ;;  %v3214_v35 = vpop.eup %3213 }
 0x555   :  { %3223 = vpow2.f32 %v2579_v31  ;;  %v3216_v37 = vpop.eup %3215 }
 0x556   :  { %3225 = vrcp.f32 %v1714_v32  ;;  %v3218_v20 = vpop.eup %3217  ;;  %v1739_v59 = vadd.f32 1.0, %v3216_v37 }
 0x557   :  { %3227 = vrcp.f32 %v1726_v46 }
 0x558   :  { %3229 = vrcp.f32 %v1739_v59  ;;  %v4401_v59 = vld [vmem:[%s4642_s2 + $0xb0] ss:$20 sps:$4 sm:$0xff]  }
 0x55d   :  { %v3220_v0 = vpop.eup %3219 }
 0x55e   :  { %v3222_v39 = vpop.eup %3221  ;;  %v1747_v42 = vmul.f32 %v3220_v0, %v3214_v35 }
 0x55f   :  { %v3224_v43 = vpop.eup %3223  ;;  %v1745_v5 = vmul.f32 %v3222_v39, %v4208_v51 }
 0x560   :  { %v3226_v55 = vpop.eup %3225  ;;  %v1740_v22 = vadd.f32 1.0, %v3224_v43  ;;  %v4374_v43 = vld [vmem:[%s4642_s2 + $0x38] ss:$20 sps:$4 sm:$0xff]  }
 0x561   :  { %v4344_v8 = vadd.f32 %v1747_v42, %v1745_v5  ;;  %v1748_v58 = vmul.f32 %v3226_v55, %v3218_v20  ;;  %v1672_v21 = vpop.f32.mrb[36].mxu1  ;;  %v3228_v19 = vpop.eup %3227  ;;  %v4362_v42 = vld [vmem:[%s4642_s2 + $0x10] ss:$20 sps:$4 sm:$0xff]   ;;  %v4383_v5 = vld [vmem:[%s4642_s2 + $0x60] ss:$20 sps:$4 sm:$0xff]  }
 0x562   :  { %v1679_v23 = vadd.f32 %v3954_v60, %v1672_v21  ;;  %v2772_v30 = vpop.f32.mrb[37].mxu1  ;;  %v1746_v31 = vmul.f32 %v3228_v19, %v4214_v24  ;;  %v3230_v24 = vpop.eup %3229  ;;  %v4392_v55 = vld [vmem:[%s4642_s2 + $0x88] ss:$20 sps:$4 sm:$0xff]   ;;  %v4419_v21 = vld [vmem:[%s4642_s2 + $0x100] ss:$20 sps:$4 sm:$0xff]  }
 0x563   :  { %v1675_v47 = vpop.f32.mrb[38].mxu1  ;;  %3231 = vtanh.f32 %v4344_v8  ;;  %v4428_v19 = vld [vmem:[%s4642_s2 + $0x128] ss:$20 sps:$4 sm:$0xff]  }
 0x564   :  { %v2612_v33 = vpack.c.bf16 %v1679_v23, %v1679_v23  ;;  %v1680_v32 = vadd.f32 %v3954_v60, %v1675_v47  ;;  %v2773_v34 = vpop.f32.mrb[39].mxu1  ;;  %v4350_v51 = vadd.f32 %v1748_v58, %v1746_v31  ;;  %3233 = vrcp.f32 %v1740_v22  ;;  %v4410_v58 = vld [vmem:[%s4642_s2 + $0xd8] ss:$20 sps:$4 sm:$0xff]  }
 0x566   :  { %1689 = vst [vmem:[%s4647_s7 + $0xc] sm:$0xf] %v2612_v33  ;;  %v2613_v46 = vpack.c.bf16 %v1680_v32, %v1680_v32  ;;  %3235 = vtanh.f32 %v4350_v51 }
 0x568   :  { %1690 = vst [vmem:[%s4647_s7 + $0x2c] sm:$0xf] %v2613_v46 }
 0x56d   :  { %v3232_v35 = vpop.eup %3231 }
 0x56e   :  { %v3234_v60 = vpop.eup %3233  ;;  %v1753_v20 = vmul.f32 %v3232_v35, %v3230_v24 }
 0x570   :  { %v3236_v37 = vpop.eup %3235 }
 0x571   :  { %v1754_v0 = vmul.f32 %v3236_v37, %v3234_v60 }
 0x573   :  { %v1755_v39 = vpack.c.bf16 %v1754_v0, %v1753_v20 }
 0x575   :  { %1789 = vmatmul.mubr.bf16.vlgmr.msra.gmra.mrb[20].mxu0 %v1755_v39  ;;  %1832 = vmatmul.mubr.bf16.vlgmr.msra.gmra.mrb[20].mxu1 %v1755_v39 }
 0x576   :  { %2775 = vmatpush3.bf16.msra.mxu0 %v4362_v42  ;;  %2790 = vmatprep.mubr.msk.bf16.mxu0 %vm3424_vm1, %v4658_v62 }
 0x577   :  { %2776 = vmatprep.subr.bf16.mxu0 %v4658_v62  ;;  %2004 = vmatpush1.bf16.msra.mxu1 %v4054_v36 }
 0x578   :  { %2005 = vmatprep.subr.bf16.mxu1 %v4060_v7  ;;  %2035 = vmatprep.mubr.bf16.mxu1 %v4659_v1 }
 0x57a   :  { %2777 = vmatpush3.bf16.msra.mxu0 %v4374_v43 }
 0x57b   :  { %2778 = vmatprep.subr.bf16.mxu0 %v4658_v62  ;;  %2006 = vmatpush1.bf16.msra.mxu1 %v4069_v57 }
 0x57c   :  { %2007 = vmatprep.subr.bf16.mxu1 %v4075_v17 }
 0x57e   :  { %2779 = vmatpush3.bf16.msra.mxu0 %v4383_v5 }
 0x57f   :  { %2780 = vmatprep.subr.bf16.mxu0 %v4658_v62  ;;  %2008 = vmatpush1.bf16.msra.mxu1 %v4083_v9 }
 0x580   :  { %2009 = vmatprep.subr.bf16.mxu1 %v4089_v61 }
 0x582   :  { %2781 = vmatpush3.bf16.msra.mxu0 %v4392_v55 }
 0x583   :  { %2782 = vmatprep.subr.bf16.mxu0 %v4658_v62  ;;  %2010 = vmatpush1.bf16.msra.mxu1 %v4097_v63 }
 0x584   :  { %2011 = vmatprep.subr.bf16.mxu1 %v4289_v14 }
 0x586   :  { %2783 = vmatpush3.bf16.msra.mxu0 %v4401_v59 }
 0x587   :  { %2784 = vmatprep.subr.bf16.mxu0 %v4658_v62  ;;  %2012 = vmatpush1.bf16.msra.mxu1 %v4295_v15 }
 0x588   :  { %2013 = vmatprep.subr.bf16.mxu1 %v4301_v16 }
 0x58a   :  { %2785 = vmatpush3.bf16.msra.mxu0 %v4410_v58 }
 0x58b   :  { %2786 = vmatprep.subr.bf16.mxu0 %v4658_v62  ;;  %2014 = vmatpush1.bf16.msra.mxu1 %v4307_v18 }
 0x58c   :  { %2015 = vmatprep.subr.bf16.mxu1 %v4313_v25 }
 0x58e   :  { %2787 = vmatpush3.bf16.msra.mxu0 %v4419_v21 }
 0x58f   :  { %2788 = vmatprep.subr.bf16.mxu0 %v4658_v62  ;;  %2016 = vmatpush1.bf16.msra.mxu1 %v4319_v26 }
 0x590   :  { %2017 = vmatprep.subr.bf16.mxu1 %v4325_v28 }
 0x592   :  { %2789 = vmatpush3.bf16.msra.mxu0 %v4428_v19 }
 0x593   :  { %1960 = vmatprep.subr.bf16.mxu0 %v4117_v38  ;;  %2018 = vmatpush1.bf16.msra.mxu1 %v4331_v29 }
 0x594   :  { %2794 = vmatprep.subr.bf16.mxu1 %v4658_v62 }
 0x595   :  { %2791 = vmatmul.mubr.bf16.vlgmr.msra.gmra.mrb[40].mxu0 %v1755_v39 }
 0x596   :  { %1961 = vmatpush1.bf16.msra.mxu0 %v4125_v40  ;;  %1992 = vmatprep.mubr.bf16.mxu0 %v4659_v1 }
 0x597   :  { %1962 = vmatprep.subr.bf16.mxu0 %v4132_v41 }
 0x59a   :  { %1963 = vmatpush1.bf16.msra.mxu0 %v4138_v44 }
 0x59b   :  { %1964 = vmatprep.subr.bf16.mxu0 %v4144_v48 }
 0x59e   :  { %1965 = vmatpush1.bf16.msra.mxu0 %v4150_v49 }
 0x59f   :  { %1966 = vmatprep.subr.bf16.mxu0 %v4156_v50 }
 0x5a2   :  { %1967 = vmatpush1.bf16.msra.mxu0 %v4162_v52 }
 0x5a3   :  { %1968 = vmatprep.subr.bf16.mxu0 %v4168_v6 }
 0x5a6   :  { %1969 = vmatpush1.bf16.msra.mxu0 %v4174_v2 }
 0x5a7   :  { %1970 = vmatprep.subr.bf16.mxu0 %v4180_v27 }
 0x5aa   :  { %1971 = vmatpush1.bf16.msra.mxu0 %v4186_v54 }
 0x5ab   :  { %1972 = vmatprep.subr.bf16.mxu0 %v4192_v53 }
 0x5ae   :  { %1973 = vmatpush1.bf16.msra.mxu0 %v4255_v10 }
 0x5af   :  { %1974 = vmatprep.subr.bf16.mxu0 %v4261_v11 }
 0x5b2   :  { %1975 = vmatpush1.bf16.msra.mxu0 %v4274_v13 }
 0x5b3   :  { %2164 = vmatprep.subr.bf16.mxu0 %v4117_v38 }
 0x648   :  { %v1790_v22 = vpop.f32.mrb[20].mxu0  ;;  %v1833_v23 = vpop.f32.mrb[20].mxu1 }
 0x649   :  { %v2874_v30 = vadd.f32 %v1790_v22, %v3822_v3  ;;  %v1792_v31 = vpop.f32.mrb[21].mxu0  ;;  %v1835_v47 = vpop.f32.mrb[21].mxu1  ;;  %v2906_v22 = vadd.f32 %v1833_v23, %v3832_v56 }
 0x64a   :  { %v2875_v33 = vadd.f32 %v1792_v31, %v3824_v4  ;;  %v1794_v32 = vpop.f32.mrb[22].mxu0  ;;  %v1837_v34 = vpop.f32.mrb[22].mxu1  ;;  %v2907_v39 = vadd.f32 %v1835_v47, %v3829_v45 }
 0x64b   :  { %v2582_v46 = vmul.f32 -1.442695, %v2874_v30  ;;  %v2876_v24 = vadd.f32 %v1794_v32, %v3822_v3  ;;  %v1796_v35 = vpop.f32.mrb[23].mxu0  ;;  %v1839_v60 = vpop.f32.mrb[23].mxu1  ;;  %v2908_v32 = vadd.f32 %v1837_v34, %v3832_v56 }
 0x64c   :  { %v2584_v37 = vmul.f32 -1.442695, %v2875_v33  ;;  %v2877_v20 = vadd.f32 %v1796_v35, %v3824_v4  ;;  %v2586_v31 = vmul.f32 -1.442695, %v2907_v39  ;;  %v2909_v30 = vadd.f32 %v1839_v60, %v3829_v45 }
 0x64d   :  { %3237 = vpow2.f32 %v2582_v46  ;;  %v2583_v38 = vmul.f32 -1.442695, %v2876_v24 }
 0x64e   :  { %3239 = vpow2.f32 %v2584_v37  ;;  %v2585_v0 = vmul.f32 -1.442695, %v2877_v20  ;;  %v2587_v46 = vmul.f32 -1.442695, %v2909_v30 }
 0x64f   :  { %3241 = vpow2.f32 %v2583_v38 }
 0x650   :  { %3243 = vpow2.f32 %v2585_v0 }
 0x651   :  { %3245 = vtanh.f32 %v2906_v22 }
 0x652   :  { %3247 = vpow2.f32 %v2586_v31 }
 0x653   :  { %3249 = vtanh.f32 %v2908_v32 }
 0x657   :  { %v3238_v3 = vpop.eup %3237 }
 0x658   :  { %v3240_v33 = vpop.eup %3239  ;;  %v1917_v29 = vadd.f32 1.0, %v3238_v3 }
 0x659   :  { %v1929_v24 = vadd.f32 1.0, %v3240_v33  ;;  %v3242_v35 = vpop.eup %3241 }
 0x65a   :  { %3251 = vrcp.f32 %v1917_v29  ;;  %v1918_v47 = vadd.f32 1.0, %v3242_v35  ;;  %v3244_v37 = vpop.eup %3243  ;;  %v4465_v35 = vld [vmem:[%s4644_s4] ss:$0 sm:$0xff] }
 0x65b   :  { %3253 = vrcp.f32 %v1929_v24  ;;  %v1930_v23 = vadd.f32 1.0, %v3244_v37  ;;  %v3246_v60 = vpop.eup %3245 }
 0x65c   :  { %3255 = vpow2.f32 %v2587_v46  ;;  %v3248_v20 = vpop.eup %3247 }
 0x65d   :  { %3257 = vrcp.f32 %v1918_v47  ;;  %v3250_v34 = vpop.eup %3249  ;;  %v1943_v30 = vadd.f32 1.0, %v3248_v20 }
 0x65e   :  { %3259 = vrcp.f32 %v1930_v23 }
 0x65f   :  { %3261 = vrcp.f32 %v1943_v30 }
 0x664   :  { %v3252_v38 = vpop.eup %3251 }
 0x665   :  { %v3254_v0 = vpop.eup %3253  ;;  %v1951_v39 = vmul.f32 %v3252_v38, %v3246_v60 }
 0x666   :  { %v3256_v3 = vpop.eup %3255  ;;  %v1949_v22 = vmul.f32 %v3254_v0, %v4344_v8 }
 0x667   :  { %v3258_v31 = vpop.eup %3257  ;;  %v1944_v46 = vadd.f32 1.0, %v3256_v3 }
 0x668   :  { %v4460_v32 = vadd.f32 %v1951_v39, %v1949_v22  ;;  %v1952_v29 = vmul.f32 %v3258_v31, %v3250_v34  ;;  %v1876_v33 = vpop.f32.mrb[40].mxu0  ;;  %v3260_v24 = vpop.eup %3259 }
 0x669   :  { %v1883_v47 = vadd.f32 %v4465_v35, %v1876_v33  ;;  %v2792_v37 = vpop.f32.mrb[41].mxu0  ;;  %v1950_v23 = vmul.f32 %v3260_v24, %v4350_v51  ;;  %v3262_v51 = vpop.eup %3261 }
 0x66a   :  { %v1879_v60 = vpop.f32.mrb[42].mxu0  ;;  %3263 = vtanh.f32 %v4460_v32 }
 0x66b   :  { %v2614_v8 = vpack.c.bf16 %v1883_v47, %v1883_v47  ;;  %v1884_v20 = vadd.f32 %v4465_v35, %v1879_v60  ;;  %v2793_v38 = vpop.f32.mrb[43].mxu0  ;;  %v4471_v34 = vadd.f32 %v1952_v29, %v1950_v23  ;;  %3265 = vrcp.f32 %v1944_v46 }
 0x66d   :  { %1893 = vst [vmem:[%s4647_s7 + $0x10] sm:$0xf] %v2614_v8  ;;  %v2615_v0 = vpack.c.bf16 %v1884_v20, %v1884_v20  ;;  %3267 = vtanh.f32 %v4471_v34 }
 0x66f   :  { %1894 = vst [vmem:[%s4647_s7 + $0x30] sm:$0xf] %v2615_v0 }
 0x674   :  { %v3264_v39 = vpop.eup %3263 }
 0x675   :  { %v3266_v3 = vpop.eup %3265  ;;  %v1957_v31 = vmul.f32 %v3264_v39, %v3262_v51 }
 0x677   :  { %v3268_v22 = vpop.eup %3267 }
 0x678   :  { %v1958_v30 = vmul.f32 %v3268_v22, %v3266_v3 }
 0x67a   :  { %v1959_v29 = vpack.c.bf16 %v1958_v30, %v1957_v31 }
 0x67c   :  { %1993 = vmatmul.mubr.bf16.vlgmr.msra.gmra.mrb[24].mxu0 %v1959_v29  ;;  %2036 = vmatmul.mubr.bf16.vlgmr.msra.gmra.mrb[24].mxu1 %v1959_v29 }
 0x67d   :  { %2795 = vmatpush3.bf16.msra.mxu1 %v4362_v42  ;;  %2810 = vmatprep.mubr.msk.bf16.mxu1 %vm3424_vm1, %v4658_v62 }
 0x67e   :  { %2796 = vmatprep.subr.bf16.mxu1 %v4658_v62  ;;  %2165 = vmatpush1.bf16.msra.mxu0 %v4125_v40 }
 0x67f   :  { %2166 = vmatprep.subr.bf16.mxu0 %v4132_v41  ;;  %2196 = vmatprep.mubr.bf16.mxu0 %v4659_v1 }
 0x681   :  { %2797 = vmatpush3.bf16.msra.mxu1 %v4374_v43 }
 0x682   :  { %2798 = vmatprep.subr.bf16.mxu1 %v4658_v62  ;;  %2167 = vmatpush1.bf16.msra.mxu0 %v4138_v44 }
 0x683   :  { %2168 = vmatprep.subr.bf16.mxu0 %v4144_v48 }
 0x685   :  { %2799 = vmatpush3.bf16.msra.mxu1 %v4383_v5 }
 0x686   :  { %2800 = vmatprep.subr.bf16.mxu1 %v4658_v62  ;;  %2169 = vmatpush1.bf16.msra.mxu0 %v4150_v49 }
 0x687   :  { %2170 = vmatprep.subr.bf16.mxu0 %v4156_v50 }
 0x689   :  { %2801 = vmatpush3.bf16.msra.mxu1 %v4392_v55 }
 0x68a   :  { %2802 = vmatprep.subr.bf16.mxu1 %v4658_v62  ;;  %2171 = vmatpush1.bf16.msra.mxu0 %v4162_v52 }
 0x68b   :  { %2172 = vmatprep.subr.bf16.mxu0 %v4168_v6 }
 0x68d   :  { %2803 = vmatpush3.bf16.msra.mxu1 %v4401_v59 }
 0x68e   :  { %2804 = vmatprep.subr.bf16.mxu1 %v4658_v62  ;;  %2173 = vmatpush1.bf16.msra.mxu0 %v4174_v2 }
 0x68f   :  { %2174 = vmatprep.subr.bf16.mxu0 %v4180_v27 }
 0x691   :  { %2805 = vmatpush3.bf16.msra.mxu1 %v4410_v58 }
 0x692   :  { %2806 = vmatprep.subr.bf16.mxu1 %v4658_v62  ;;  %2175 = vmatpush1.bf16.msra.mxu0 %v4186_v54 }
 0x693   :  { %2176 = vmatprep.subr.bf16.mxu0 %v4192_v53 }
 0x695   :  { %2807 = vmatpush3.bf16.msra.mxu1 %v4419_v21 }
 0x696   :  { %2808 = vmatprep.subr.bf16.mxu1 %v4658_v62  ;;  %2177 = vmatpush1.bf16.msra.mxu0 %v4255_v10 }
 0x697   :  { %2178 = vmatprep.subr.bf16.mxu0 %v4261_v11 }
 0x699   :  { %2809 = vmatpush3.bf16.msra.mxu1 %v4428_v19 }
 0x69a   :  { %2207 = vmatprep.subr.bf16.mxu1 %v4268_v12  ;;  %2179 = vmatpush1.bf16.msra.mxu0 %v4274_v13 }
 0x69b   :  { %2814 = vmatprep.subr.bf16.mxu0 %v4658_v62 }
 0x69c   :  { %2811 = vmatmul.mubr.bf16.vlgmr.msra.gmra.mrb[40].mxu1 %v1959_v29 }
 0x69d   :  { %2208 = vmatpush1.bf16.msra.mxu1 %v4054_v36  ;;  %2239 = vmatprep.mubr.bf16.mxu1 %v4659_v1  ;;  %v4661_v1 = vld [vmem:[#allocation10_spill] sm:$0xff] }
 0x69e   :  { %2209 = vmatprep.subr.bf16.mxu1 %v4060_v7 }
 0x6a1   :  { %2210 = vmatpush1.bf16.msra.mxu1 %v4069_v57  ;;  %v4662_v57 = vld [vmem:[#allocation9_spill] sm:$0xff] }
 0x6a2   :  { %2211 = vmatprep.subr.bf16.mxu1 %v4075_v17 }
 0x6a5   :  { %2212 = vmatpush1.bf16.msra.mxu1 %v4083_v9 }
 0x6a6   :  { %2213 = vmatprep.subr.bf16.mxu1 %v4089_v61 }
 0x6a9   :  { %2214 = vmatpush1.bf16.msra.mxu1 %v4097_v63 }
 0x6aa   :  { %2215 = vmatprep.subr.bf16.mxu1 %v4289_v14 }
 0x6ad   :  { %2216 = vmatpush1.bf16.msra.mxu1 %v4295_v15 }
 0x6ae   :  { %2217 = vmatprep.subr.bf16.mxu1 %v4301_v16 }
 0x6b1   :  { %2218 = vmatpush1.bf16.msra.mxu1 %v4307_v18 }
 0x6b2   :  { %2219 = vmatprep.subr.bf16.mxu1 %v4313_v25 }
 0x6b5   :  { %2220 = vmatpush1.bf16.msra.mxu1 %v4319_v26 }
 0x6b6   :  { %2221 = vmatprep.subr.bf16.mxu1 %v4325_v28 }
 0x6b9   :  { %2222 = vmatpush1.bf16.msra.mxu1 %v4661_v1 }
 0x6ba   :  { %2834 = vmatprep.subr.bf16.mxu1 %v4658_v62 }
 0x74f   :  { %v1994_v36 = vpop.f32.mrb[24].mxu0  ;;  %v2037_v7 = vpop.f32.mrb[24].mxu1 }
 0x750   :  { %v2878_v17 = vadd.f32 %v1994_v36, %v4662_v57  ;;  %v1996_v9 = vpop.f32.mrb[25].mxu0  ;;  %v2039_v61 = vpop.f32.mrb[25].mxu1  ;;  %v2910_v53 = vadd.f32 %v2037_v7, %v3832_v56 }
 0x751   :  { %v2879_v63 = vadd.f32 %v1996_v9, %v3824_v4  ;;  %v1998_v40 = vpop.f32.mrb[26].mxu0  ;;  %v2041_v41 = vpop.f32.mrb[26].mxu1  ;;  %v2911_v54 = vadd.f32 %v2039_v61, %v3829_v45 }
 0x752   :  { %v2590_v44 = vmul.f32 -1.442695, %v2878_v17  ;;  %v2880_v48 = vadd.f32 %v1998_v40, %v4662_v57  ;;  %v2000_v49 = vpop.f32.mrb[27].mxu0  ;;  %v2043_v50 = vpop.f32.mrb[27].mxu1  ;;  %v2912_v12 = vadd.f32 %v2041_v41, %v3832_v56 }
 0x753   :  { %v2592_v52 = vmul.f32 -1.442695, %v2879_v63  ;;  %v2881_v6 = vadd.f32 %v2000_v49, %v3824_v4  ;;  %v2594_v10 = vmul.f32 -1.442695, %v2911_v54  ;;  %v2913_v11 = vadd.f32 %v2043_v50, %v3829_v45 }
 0x754   :  { %3269 = vpow2.f32 %v2590_v44  ;;  %v2591_v2 = vmul.f32 -1.442695, %v2880_v48 }
 0x755   :  { %3271 = vpow2.f32 %v2592_v52  ;;  %v2593_v27 = vmul.f32 -1.442695, %v2881_v6  ;;  %v2595_v16 = vmul.f32 -1.442695, %v2913_v11 }
 0x756   :  { %3273 = vpow2.f32 %v2591_v2 }
 0x757   :  { %3275 = vpow2.f32 %v2593_v27 }
 0x758   :  { %3277 = vtanh.f32 %v2910_v53 }
 0x759   :  { %3279 = vpow2.f32 %v2594_v10 }
 0x75a   :  { %3281 = vtanh.f32 %v2912_v12 }
 0x75e   :  { %v3270_v13 = vpop.eup %3269 }
 0x75f   :  { %v3272_v14 = vpop.eup %3271  ;;  %v2121_v15 = vadd.f32 1.0, %v3270_v13 }
 0x760   :  { %v2133_v18 = vadd.f32 1.0, %v3272_v14  ;;  %v3274_v25 = vpop.eup %3273 }
 0x761   :  { %3283 = vrcp.f32 %v2121_v15  ;;  %v2122_v26 = vadd.f32 1.0, %v3274_v25  ;;  %v3276_v28 = vpop.eup %3275 }
 0x762   :  { %3285 = vrcp.f32 %v2133_v18  ;;  %v2134_v33 = vadd.f32 1.0, %v3276_v28  ;;  %v3278_v24 = vpop.eup %3277 }
 0x763   :  { %3287 = vpow2.f32 %v2595_v16  ;;  %v3280_v46 = vpop.eup %3279 }
 0x764   :  { %3289 = vrcp.f32 %v2122_v26  ;;  %v3282_v47 = vpop.eup %3281  ;;  %v2147_v0 = vadd.f32 1.0, %v3280_v46 }
 0x765   :  { %3291 = vrcp.f32 %v2134_v33 }
 0x766   :  { %3293 = vrcp.f32 %v2147_v0 }
 0x76b   :  { %v3284_v37 = vpop.eup %3283 }
 0x76c   :  { %v3286_v23 = vpop.eup %3285  ;;  %v2155_v60 = vmul.f32 %v3284_v37, %v3278_v24 }
 0x76d   :  { %v3288_v8 = vpop.eup %3287  ;;  %v2153_v20 = vmul.f32 %v3286_v23, %v4460_v32 }
 0x76e   :  { %v3290_v38 = vpop.eup %3289  ;;  %v2148_v31 = vadd.f32 1.0, %v3288_v8 }
 0x76f   :  { %v4541_v51 = vadd.f32 %v2155_v60, %v2153_v20  ;;  %v2156_v39 = vmul.f32 %v3290_v38, %v3282_v47  ;;  %v2080_v3 = vpop.f32.mrb[40].mxu1  ;;  %v3292_v22 = vpop.eup %3291 }
 0x770   :  { %v2087_v30 = vadd.f32 %v4465_v35, %v2080_v3  ;;  %v2812_v29 = vpop.f32.mrb[41].mxu1  ;;  %v2154_v1 = vmul.f32 %v3292_v22, %v4471_v34  ;;  %v3294_v34 = vpop.eup %3293 }
 0x771   :  { %v2083_v36 = vpop.f32.mrb[42].mxu1  ;;  %3295 = vtanh.f32 %v4541_v51 }
 0x772   :  { %v2616_v7 = vpack.c.bf16 %v2087_v30, %v2087_v30  ;;  %v2088_v17 = vadd.f32 %v4465_v35, %v2083_v36  ;;  %v2813_v9 = vpop.f32.mrb[43].mxu1  ;;  %v4547_v32 = vadd.f32 %v2156_v39, %v2154_v1  ;;  %3297 = vrcp.f32 %v2148_v31 }
 0x774   :  { %2097 = vst [vmem:[%s4647_s7 + $0x14] sm:$0xf] %v2616_v7  ;;  %v2617_v61 = vpack.c.bf16 %v2088_v17, %v2088_v17  ;;  %3299 = vtanh.f32 %v4547_v32 }
 0x776   :  { %2098 = vst [vmem:[%s4647_s7 + $0x34] sm:$0xf] %v2617_v61 }
 0x77b   :  { %v3296_v63 = vpop.eup %3295 }
 0x77c   :  { %v3298_v40 = vpop.eup %3297  ;;  %v2161_v44 = vmul.f32 %v3296_v63, %v3294_v34 }
 0x77e   :  { %v3300_v41 = vpop.eup %3299 }
 0x77f   :  { %v2162_v48 = vmul.f32 %v3300_v41, %v3298_v40 }
 0x781   :  { %v2163_v49 = vpack.c.bf16 %v2162_v48, %v2161_v44 }
 0x783   :  { %2197 = vmatmul.mubr.bf16.vlgmr.msra.gmra.mrb[28].mxu0 %v2163_v49  ;;  %2240 = vmatmul.mubr.bf16.vlgmr.msra.gmra.mrb[28].mxu1 %v2163_v49 }
 0x784   :  { %2815 = vmatpush3.bf16.msra.mxu0 %v4362_v42  ;;  %2830 = vmatprep.mubr.msk.bf16.mxu0 %vm3424_vm1, %v4658_v62 }
 0x785   :  { %2816 = vmatprep.subr.bf16.mxu0 %v4658_v62  ;;  %2835 = vmatpush3.bf16.msra.mxu1 %v4362_v42 }
 0x786   :  { %2836 = vmatprep.subr.bf16.mxu1 %v4658_v62  ;;  %2850 = vmatprep.mubr.msk.bf16.mxu1 %vm3424_vm1, %v4658_v62 }
 0x788   :  { %2817 = vmatpush3.bf16.msra.mxu0 %v4374_v43 }
 0x789   :  { %2818 = vmatprep.subr.bf16.mxu0 %v4658_v62  ;;  %2837 = vmatpush3.bf16.msra.mxu1 %v4374_v43 }
 0x78a   :  { %2838 = vmatprep.subr.bf16.mxu1 %v4658_v62 }
 0x78c   :  { %2819 = vmatpush3.bf16.msra.mxu0 %v4383_v5 }
 0x78d   :  { %2820 = vmatprep.subr.bf16.mxu0 %v4658_v62  ;;  %2839 = vmatpush3.bf16.msra.mxu1 %v4383_v5 }
 0x78e   :  { %2840 = vmatprep.subr.bf16.mxu1 %v4658_v62 }
 0x790   :  { %2821 = vmatpush3.bf16.msra.mxu0 %v4392_v55 }
 0x791   :  { %2822 = vmatprep.subr.bf16.mxu0 %v4658_v62  ;;  %2841 = vmatpush3.bf16.msra.mxu1 %v4392_v55 }
 0x792   :  { %2842 = vmatprep.subr.bf16.mxu1 %v4658_v62 }
 0x794   :  { %2823 = vmatpush3.bf16.msra.mxu0 %v4401_v59 }
 0x795   :  { %2824 = vmatprep.subr.bf16.mxu0 %v4658_v62  ;;  %2843 = vmatpush3.bf16.msra.mxu1 %v4401_v59 }
 0x796   :  { %2844 = vmatprep.subr.bf16.mxu1 %v4658_v62 }
 0x798   :  { %2825 = vmatpush3.bf16.msra.mxu0 %v4410_v58 }
 0x799   :  { %2826 = vmatprep.subr.bf16.mxu0 %v4658_v62  ;;  %2845 = vmatpush3.bf16.msra.mxu1 %v4410_v58 }
 0x79a   :  { %2846 = vmatprep.subr.bf16.mxu1 %v4658_v62 }
 0x79c   :  { %2827 = vmatpush3.bf16.msra.mxu0 %v4419_v21 }
 0x79d   :  { %2828 = vmatprep.subr.bf16.mxu0 %v4658_v62  ;;  %2847 = vmatpush3.bf16.msra.mxu1 %v4419_v21 }
 0x79e   :  { %2848 = vmatprep.subr.bf16.mxu1 %v4658_v62 }
 0x7a0   :  { %2829 = vmatpush3.bf16.msra.mxu0 %v4428_v19 }
 0x7a1   :  { %2849 = vmatpush3.bf16.msra.mxu1 %v4428_v19 }
 0x7a3   :  { %2831 = vmatmul.mubr.bf16.vlgmr.msra.gmra.mrb[44].mxu0 %v2163_v49 }
 0x856   :  { %v2198_v42 = vpop.f32.mrb[28].mxu0  ;;  %v2241_v43 = vpop.f32.mrb[28].mxu1 }
 0x857   :  { %v2882_v5 = vadd.f32 %v2198_v42, %v4662_v57  ;;  %v2200_v55 = vpop.f32.mrb[29].mxu0  ;;  %v2243_v59 = vpop.f32.mrb[29].mxu1  ;;  %v2914_v11 = vadd.f32 %v2241_v43, %v3832_v56 }
 0x858   :  { %v2883_v58 = vadd.f32 %v2200_v55, %v3824_v4  ;;  %v2202_v50 = vpop.f32.mrb[30].mxu0  ;;  %v2245_v52 = vpop.f32.mrb[30].mxu1  ;;  %v2915_v10 = vadd.f32 %v2243_v59, %v3829_v45 }
 0x859   :  { %v2598_v6 = vmul.f32 -1.442695, %v2882_v5  ;;  %v2884_v21 = vadd.f32 %v2202_v50, %v4662_v57  ;;  %v2204_v2 = vpop.f32.mrb[31].mxu0  ;;  %v2247_v62 = vpop.f32.mrb[31].mxu1  ;;  %v2916_v57 = vadd.f32 %v2245_v52, %v3832_v56 }
 0x85a   :  { %v2600_v27 = vmul.f32 -1.442695, %v2883_v58  ;;  %v2885_v54 = vadd.f32 %v2204_v2, %v3824_v4  ;;  %v2602_v12 = vmul.f32 -1.442695, %v2915_v10  ;;  %v2917_v13 = vadd.f32 %v2247_v62, %v3829_v45 }
 0x85b   :  { %3301 = vpow2.f32 %v2598_v6  ;;  %v2599_v19 = vmul.f32 -1.442695, %v2884_v21 }
 0x85c   :  { %3303 = vpow2.f32 %v2600_v27  ;;  %v2601_v53 = vmul.f32 -1.442695, %v2885_v54  ;;  %v2603_v4 = vmul.f32 -1.442695, %v2917_v13 }
 0x85d   :  { %3305 = vpow2.f32 %v2599_v19 }
 0x85e   :  { %3307 = vpow2.f32 %v2601_v53 }
 0x85f   :  { %3309 = vtanh.f32 %v2914_v11 }
 0x860   :  { %3311 = vpow2.f32 %v2602_v12 }
 0x861   :  { %3313 = vtanh.f32 %v2916_v57 }
 0x865   :  { %v3302_v14 = vpop.eup %3301 }
 0x866   :  { %v3304_v15 = vpop.eup %3303  ;;  %v2325_v16 = vadd.f32 1.0, %v3302_v14 }
 0x867   :  { %v2337_v18 = vadd.f32 1.0, %v3304_v15  ;;  %v3306_v25 = vpop.eup %3305 }
 0x868   :  { %3315 = vrcp.f32 %v2325_v16  ;;  %v2326_v26 = vadd.f32 1.0, %v3306_v25  ;;  %v3308_v28 = vpop.eup %3307 }
 0x869   :  { %3317 = vrcp.f32 %v2337_v18  ;;  %v2338_v33 = vadd.f32 1.0, %v3308_v28  ;;  %v3310_v45 = vpop.eup %3309 }
 0x86a   :  { %3319 = vpow2.f32 %v2603_v4  ;;  %v3312_v24 = vpop.eup %3311 }
 0x86b   :  { %3321 = vrcp.f32 %v2326_v26  ;;  %v3314_v56 = vpop.eup %3313  ;;  %v2351_v23 = vadd.f32 1.0, %v3312_v24 }
 0x86c   :  { %3323 = vrcp.f32 %v2338_v33 }
 0x86d   :  { %3325 = vrcp.f32 %v2351_v23 }
 0x872   :  { %v3316_v46 = vpop.eup %3315 }
 0x873   :  { %v3318_v47 = vpop.eup %3317  ;;  %v2359_v37 = vmul.f32 %v3316_v46, %v3310_v45 }
 0x874   :  { %v3320_v60 = vpop.eup %3319  ;;  %v2357_v8 = vmul.f32 %v3318_v47, %v4541_v51 }
 0x875   :  { %v3322_v20 = vpop.eup %3321  ;;  %v2352_v22 = vadd.f32 1.0, %v3320_v60 }
 0x876   :  { %v2361_v38 = vadd.f32 %v2359_v37, %v2357_v8  ;;  %v2360_v0 = vmul.f32 %v3322_v20, %v3314_v56  ;;  %v2284_v39 = vpop.f32.mrb[44].mxu0  ;;  %v3324_v3 = vpop.eup %3323 }
 0x877   :  { %v2291_v31 = vadd.f32 %v4465_v35, %v2284_v39  ;;  %v2832_v30 = vpop.f32.mrb[45].mxu0  ;;  %v2358_v29 = vmul.f32 %v3324_v3, %v4547_v32  ;;  %v3326_v61 = vpop.eup %3325 }
 0x878   :  { %3327 = vtanh.f32 %v2361_v38  ;;  %2423 = vst [vmem:[#allocation5] sm:$0xff] %v2361_v38  ;;  %v2287_v1 = vpop.f32.mrb[46].mxu0 }
 0x879   :  { %v2618_v36 = vpack.c.bf16 %v2291_v31, %v2291_v31  ;;  %v2292_v7 = vadd.f32 %v4465_v35, %v2287_v1  ;;  %v2833_v17 = vpop.f32.mrb[47].mxu0  ;;  %v2362_v51 = vadd.f32 %v2360_v0, %v2358_v29  ;;  %3329 = vrcp.f32 %v2352_v22 }
 0x87b   :  { %2301 = vst [vmem:[%s4647_s7 + $0x18] sm:$0xf] %v2618_v36  ;;  %v2619_v9 = vpack.c.bf16 %v2292_v7, %v2292_v7  ;;  %3331 = vtanh.f32 %v2362_v51  ;;  %2424 = vst [vmem:[#allocation5 + $0x8] sm:$0xff] %v2362_v51 }
 0x87d   :  { %2302 = vst [vmem:[%s4647_s7 + $0x38] sm:$0xf] %v2619_v9 }
 0x882   :  { %v3328_v32 = vpop.eup %3327 }
 0x883   :  { %v2365_v34 = vmul.f32 %v3328_v32, %v3326_v61  ;;  %v3330_v63 = vpop.eup %3329 }
 0x885   :  { %2421 = vst [vmem:[#allocation3] sm:$0xff] %v2365_v34  ;;  %v3332_v40 = vpop.eup %3331 }
 0x886   :  { %v2366_v41 = vmul.f32 %v3332_v40, %v3330_v63 }
 0x888   :  { %v2367_v44 = vpack.c.bf16 %v2366_v41, %v2365_v34  ;;  %2422 = vst [vmem:[#allocation3 + $0x8] sm:$0xff] %v2366_v41 }
 0x88a   :  { %2851 = vmatmul.mubr.bf16.vlgmr.msra.gmra.mrb[44].mxu1 %v2367_v44 }
 0x88b   :  { %3385 = shalt.err (!%p3382_p4)
}
 0x88c   :  { %s3386_s19 = scalar_lea.hbm %s4648_s8, 256 }
 0x88d   :  { %p3387_p5 = scmp.ne.s32.totalorder %s4648_s8, %s3386_s19  ;;  %p3390_p6 = scmp.lt.u32.totalorder %s3386_s19, %s4648_s8 }
 0x88f   :  { %p3392_p7 = pnand %p3390_p6, %p3387_p5 }
 0x891   :  { %3395 = shalt.err (!%p3392_p7)
}
 0x892   :  { %s3426_s24 = smov 128   ;;  %s3427_s25 = smov 8  }
 0x893   :  { %2438 = dma.vmem_to_hbm [thread:$0]  %s2433_s16, 256, %s4648_s8, [#allocation4], %s3426_s24, %s3426_s24, %s3427_s25  }
 0x894   :  { %s3428_s2 = smov [#allocation5]  }
 0x895   :  { %s2444_s27 = sshll.u32 %s3428_s2, 4  ;;  %s2445_s27 = int_to_ptr.vmem [resolvable:$true] %s2444_s27 }
 0x896   :  { %s3396_s28 = scalar_lea.vmem %s2445_s27, 256  ;;  %p3401_p9 = scmp.lt.s32.totalorder %s2445_s27, %s2445_s27 }
 0x897   :  { %p3397_p8 = scmp.ne.s32.totalorder %s2445_s27, %s3396_s28  ;;  %p3402_p10 = scmp.lt.s32.totalorder %s3396_s28, %s3396_s28 }
 0x899   :  { %p3403_p11 = por %p3402_p10, %p3401_p9 }
 0x89b   :  { %p3404_p12 = pnand %p3403_p11, %p3397_p8 }
 0x89d   :  { %3407 = shalt.err (!%p3404_p12)
}
 0x89e   :  { %s3408_s30 = scalar_lea.hbm %s4649_s9, 256 }
 0x89f   :  { %p3409_p13 = scmp.ne.s32.totalorder %s4649_s9, %s3408_s30  ;;  %p3412_p0 = scmp.lt.u32.totalorder %s3408_s30, %s4649_s9 }
 0x8a1   :  { %p3414_p1 = pnand %p3412_p0, %p3409_p13 }
 0x8a3   :  { %3417 = shalt.err (!%p3414_p1)
}
 0x8a4   :  { %2450 = dma.vmem_to_hbm [thread:$0]  %s2445_s27, 256, %s4649_s9, [#allocation6], %s3426_s24, %s3426_s24, %s3427_s25  }
 0x95d   :  { %v2402_v48 = vpop.f32.mrb[44].mxu1 }
 0x95e   :  { %v2409_v49 = vadd.f32 %v4465_v35, %v2402_v48  ;;  %v2852_v42 = vpop.f32.mrb[45].mxu1 }
 0x95f   :  { %v2405_v43 = vpop.f32.mrb[46].mxu1 }
 0x960   :  { %v2620_v5 = vpack.c.bf16 %v2409_v49, %v2409_v49  ;;  %v2410_v55 = vadd.f32 %v4465_v35, %v2405_v43  ;;  %v2853_v59 = vpop.f32.mrb[47].mxu1 }
 0x962   :  { %2419 = vst [vmem:[%s4647_s7 + $0x1c] sm:$0xf] %v2620_v5  ;;  %v2621_v58 = vpack.c.bf16 %v2410_v55, %v2410_v55 }
 0x964   :  { %2420 = vst [vmem:[%s4647_s7 + $0x3c] sm:$0xf] %v2621_v58 }
 0x965   :  { %3418 = dma.done.wait [#allocation4], 256  }
 0x966   :  { %3419 = vsyncadd [#allocation4], 4294967040 }
 0x967   :  { %3420 = dma.done.wait [#allocation6], 256  }
 0x968   :  { %3421 = vsyncadd [#allocation6], 4294967040 }
 0x969   :  { %2459 = vsyncpa [#allocation4], 1 }
 0x96a   :  { %2460 = vsyncpa [#allocation6], 1 }

</bundles_post_ra>
